<compile_context>
chip_gen: v7x
topology: tpu7x:2x2x1
jax: 0.10.0
libtpu: 0.0.40
codegen_flags: <defaults>
</compile_context>

<pallas_src>
import functools

import numpy as np
import jax
import jax.numpy as jnp
from jax.experimental import pallas as pl
from jax.experimental.pallas import tpu as pltpu


# ----------------------------------------------------------------------------
# ClassMaskCreator equivalent: contiguous blocks of hidden[0]//n_parts neurons,
# last part takes the remainder.
# ----------------------------------------------------------------------------
def _part_masks(h0, n_parts):
    npc = h0 // n_parts
    masks = np.zeros((n_parts, h0), np.float32)
    start = 0
    for pid in range(n_parts):
        end = h0 if pid == n_parts - 1 else start + npc
        masks[pid, start:end] = 1.0
        start = end
    return masks


# ----------------------------------------------------------------------------
# Pallas kernel (transposed layout: activations are (features, tile_m))
# ----------------------------------------------------------------------------
def _make_kernel(n_layers, h1, use_leaky_relu, compute_dtype):
    n_extra = n_layers - 2   # hidden layers after layer 1

    def act(v):
        if use_leaky_relu:
            return jnp.where(v > 0, v, 0.01 * v)   # F.leaky_relu default slope
        return jnp.maximum(v, 0.0)                  # F.relu

    def dotc(w, a):
        # Weights are pre-cast to compute_dtype in the wrapper; only the
        # activation is cast per tile.  f32 accumulation on the MXU.
        return jnp.dot(w, a.astype(compute_dtype),
                       preferred_element_type=jnp.float32)

    def kernel(*refs):
        (x_ref, exp_ref, w0x_ref, w0s_ref, w0c_ref, b0_ref,
         w1_ref, b1_ref) = refs[:8]
        idx = 8
        hidden = []
        for _ in range(n_extra):
            hidden.append((refs[idx], refs[idx + 1]))
            idx += 2
        wfo_ref, wfc_ref, bfin_ref = refs[idx], refs[idx + 1], refs[idx + 2]
        o_ref = refs[-1]          # (out_pad, tile_m)

        xT = x_ref[...]           # (3, tile_m) f32 raw coords (transposed)

        # --- fused NeRF positional embedding, folded into layer 0 ---------
        # xs[3*j + c, :] = 2^j * x[c, :]   (f32 expansion dot keeps the
        # high-frequency sin/cos arguments at full precision)
        xs = jnp.dot(exp_ref[...], xT, preferred_element_type=jnp.float32)
        h0a = (dotc(w0x_ref[...], xT)
               + dotc(w0s_ref[...], jnp.sin(xs))
               + dotc(w0c_ref[...], jnp.cos(xs))
               + b0_ref[...])     # (h1, tile_m); NO activation after layer 0

        # --- stacked layer 1: rows [0:h1] = occ branch, rows [h1:] = the P
        #     mask-folded part branches.  One dot + one bias/relu pass. ------
        z = act(dotc(w1_ref[...], h0a) + b1_ref[...])   # ((P+1)*h1, tile_m)

        # --- occupancy branch through the remaining hidden layers ----------
        h = z[:h1]
        for (w_ref, b_ref) in hidden:
            h = act(dotc(w_ref[...], h) + b_ref[...])

        # --- fused heads: occ head on h, block-diagonal class heads on the
        #     part rows of z.  Two dots, one padded lane-dense store. --------
        out = dotc(wfo_ref[...], h) + dotc(wfc_ref[...], z[h1:]) + bfin_ref[...]
        o_ref[...] = out.astype(o_ref.dtype)

    return kernel


# ----------------------------------------------------------------------------
# Wrapper
# ----------------------------------------------------------------------------
@functools.partial(jax.jit,
                   static_argnames=("n_of_parts", "multires", "use_leaky_relu",
                                    "tile_m", "compute_dtype"))
def mlp3d_final_forward(coords, params, *, n_of_parts, multires=10,
                        use_leaky_relu=False, tile_m=1024,
                        compute_dtype=jnp.bfloat16):
    """coords: (B, N, 3) f32.
    params: {'layers': [(W,b)...] (W is (in,out)), 'occ_head': (W,b),
             'class_heads': [(W,b)] * n_of_parts}.
    Returns {'model_in', 'model_out', 'part_classification'} (matches torch keys).
    output_type is stored but unused in MLP3D_final.forward, so no output
    nonlinearity is applied here either.
    """
    cdt = compute_dtype
    layers = params["layers"]
    w_occ, b_occ = params["occ_head"]
    class_heads = params["class_heads"]

    n_layers = len(layers)
    assert n_layers >= 2, "MLP3D_final.forward needs >= 2 layers"
    hidden_sizes = [w.shape[1] for (w, _) in layers]
    h1 = hidden_sizes[0]
    # Class masks have length hidden[0] and are broadcast against layer-1
    # outputs / class-head inputs in the reference module.
    assert all(h == h1 for h in hidden_sizes), "hidden widths must be equal"
    emb_dim = 3 * (1 + 2 * multires)
    assert layers[0][0].shape[0] == emb_dim
    out_size = w_occ.shape[1]
    P = n_of_parts
    out_w = out_size + P
    out_pad = max(8, ((out_w + 7) // 8) * 8)   # unmasked 8-sublane store

    B, N, C = coords.shape
    assert C == 3
    M = B * N
    M_pad = ((M + tile_m - 1) // tile_m) * tile_m

    # Rows-on-lanes layout: coords as (3, M_pad).  One-time XLA transpose of a
    # 12 B/row array; the kernel then reads 12 B/row, writes out_pad*4 B/row.
    x = coords.reshape(M, 3)
    if M_pad != M:
        x = jnp.pad(x, ((0, M_pad - M), (0, 0)))
    xT = x.T                                            # (3, M_pad)

    masks_np = _part_masks(h1, P)                       # (P, h1) numpy
    masks = jnp.asarray(masks_np)

    # --- layer-0 weight split to match the in-kernel embedding order --------
    # embedding columns: [x, sin(2^0 x), cos(2^0 x), ..., sin(2^(m-1)x), cos(...)]
    # in-kernel xs rows: j*3 + c  ->  2^j * x_c
    w0, b0 = layers[0]                                  # (63, h1), (h1,)
    w0x = w0[:3].T.astype(cdt)                          # (h1, 3)
    w_sc = w0[3:].reshape(multires, 2, 3, h1)           # [freq, sin/cos, chan, out]
    w0s = w_sc[:, 0].reshape(3 * multires, h1).T.astype(cdt)   # (h1, 3m)
    w0c = w_sc[:, 1].reshape(3 * multires, h1).T.astype(cdt)   # (h1, 3m)
    b0T = b0.reshape(h1, 1)

    expand = np.zeros((3 * multires, 3), np.float32)    # xs = expand @ xT
    for j in range(multires):
        expand[3 * j:3 * j + 3, :] = np.eye(3, dtype=np.float32) * (2.0 ** j)
    expand = jnp.asarray(expand)

    # --- stacked layer 1: [un-masked ; P mask-folded copies] ----------------
    w1, b1 = layers[1]                                  # (h1, h1), (h1,)
    w1_stack = jnp.concatenate(
        [w1.T] + [(w1 * masks[p][:, None]).T for p in range(P)], axis=0
    ).astype(cdt)                                       # ((P+1)*h1, h1)
    b1_stack = jnp.tile(b1.reshape(h1, 1), (P + 1, 1))  # ((P+1)*h1, 1)

    # --- remaining hidden layers (occ branch only) ---------------------------
    hidden_ops = []
    for l in range(2, n_layers):
        w, b = layers[l]
        hidden_ops.extend([w.T.astype(cdt), b.reshape(-1, 1)])

    # --- fused heads: occ head + block-diagonal mask-folded class heads ------
    wfin_occ = jnp.zeros((out_pad, h1), jnp.float32).at[:out_size, :].set(w_occ.T)
    wfin_occ = wfin_occ.astype(cdt)
    cls_rows = []
    for p in range(P):
        wc, _ = class_heads[p]                          # (h1, 1)
        row = jnp.zeros((P * h1,), jnp.float32)
        row = row.at[p * h1:(p + 1) * h1].set(wc[:, 0] * masks[p])
        cls_rows.append(row)
    wfin_cls = jnp.zeros((out_pad, P * h1), jnp.float32)
    wfin_cls = wfin_cls.at[out_size:out_size + P, :].set(jnp.stack(cls_rows))
    wfin_cls = wfin_cls.astype(cdt)
    bfin = jnp.zeros((out_pad, 1), jnp.float32)
    bfin = bfin.at[:out_size, 0].set(b_occ)
    bfin = bfin.at[out_size:out_size + P, 0].set(
        jnp.concatenate([class_heads[p][1] for p in range(P)]))

    operands = [xT, expand, w0x, w0s, w0c, b0T, w1_stack, b1_stack,
                *hidden_ops, wfin_occ, wfin_cls, bfin]

    in_specs = [pl.BlockSpec((3, tile_m), lambda i: (0, i))]
    for op in operands[1:]:                              # all grid-invariant 2-D
        in_specs.append(pl.BlockSpec(op.shape, lambda i: (0, 0)))
    out_spec = pl.BlockSpec((out_pad, tile_m), lambda i: (0, i))

    kernel = _make_kernel(n_layers, h1, use_leaky_relu, cdt)

    out = pl.pallas_call(
        kernel,
        out_shape=jax.ShapeDtypeStruct((out_pad, M_pad), jnp.float32),
        grid_spec=pltpu.PrefetchScalarGridSpec(
            num_scalar_prefetch=0,
            grid=(M_pad // tile_m,),
            in_specs=in_specs,
            out_specs=out_spec,
        ),
        compiler_params=pltpu.CompilerParams(
            dimension_semantics=("parallel",),
            vmem_limit_bytes=32 * 1024 * 1024),
    )(*operands)

    res = out[:out_w, :M].T                              # (M, out_w)
    occ = res[:, :out_size].reshape(B, N, out_size)
    part = res[:, out_size:].reshape(B, N, P)
    if B == 1:
        part = part[0]   # mirrors class_out.squeeze(0) before the final cat
    # TODO(synk): coords.clone().detach().requires_grad_(True) is autograd
    # bookkeeping with no Pallas meaning; coords are returned as 'model_in'.
    return {"model_in": coords, "model_out": occ, "part_classification": part}


# ----------------------------------------------------------------------------
# Pure-JAX reference (faithful transcription of MLP3D_final.forward, f32)
# ----------------------------------------------------------------------------
def ref_forward(coords, params, n_of_parts, multires, use_leaky_relu):
    layers = params["layers"]
    w_occ, b_occ = params["occ_head"]
    heads = params["class_heads"]
    L = len(layers)
    P = n_of_parts
    h0 = layers[0][0].shape[1]
    masks = jnp.asarray(_part_masks(h0, P))

    def act(v):
        return jnp.where(v > 0, v, 0.01 * v) if use_leaky_relu else jnp.maximum(v, 0.0)

    # Embedder (include_input, log-sampled freqs, [sin, cos])
    outs = [coords]
    for j in range(multires):
        f = 2.0 ** j
        outs.append(jnp.sin(coords * f))
        outs.append(jnp.cos(coords * f))
    x = jnp.concatenate(outs, axis=-1)

    x = x @ layers[0][0] + layers[0][1]
    x_occ = x
    temporal = []
    part_features = []
    for i in range(L - 1):                 # i over layers[1:]
        w, b = layers[i + 1]
        x_occ = act(x_occ @ w + b)
        for pid in range(P):
            x_part = temporal[i * pid] if i > 0 else x
            x_part = act((x_part * masks[pid]) @ w + b)
            temporal.append(x_part)
        if i == L - 2:
            part_features = list(temporal)
    occ = x_occ @ w_occ + b_occ
    cls = []
    for pid in range(P):
        wc, bc = heads[pid]
        c = (part_features[pid] * masks[pid]) @ wc + bc
        if coords.shape[0] == 1:
            c = c[0]
        cls.append(c)
    return {"model_out": occ, "part_classification": jnp.concatenate(cls, axis=-1)}


# ----------------------------------------------------------------------------
# Deterministic parameter construction (shapes mirror the nn.Module __init__)
# ----------------------------------------------------------------------------
def init_params(key, n_of_parts, out_size, hidden_neurons, multires=10):
    emb_dim = 3 * (1 + 2 * multires)
    dims = [emb_dim] + list(hidden_neurons)

    def linear(k, fan_in, fan_out):
        kw, kb = jax.random.split(k)
        bound = 1.0 / np.sqrt(fan_in)
        w = jax.random.uniform(kw, (fan_in, fan_out), jnp.float32, -bound, bound)
        b = jax.random.uniform(kb, (fan_out,), jnp.float32, -bound, bound)
        return w, b

    keys = jax.random.split(key, len(dims) - 1 + 1 + n_of_parts)
    layers = [linear(keys[i], dims[i], dims[i + 1]) for i in range(len(dims) - 1)]
    occ_head = linear(keys[len(dims) - 1], hidden_neurons[-1], out_size)
    class_heads = [linear(keys[len(dims) + p], hidden_neurons[-1], 1)
                   for p in range(n_of_parts)]
    return {"layers": layers, "occ_head": occ_head, "class_heads": class_heads}


if __name__ == "__main__":
    multires = 10
    hidden_neurons = [32, 32, 32]
    n_of_parts = 3
    out_size = 1
    use_leaky_relu = False

    key = jax.random.PRNGKey(0)
    key, kc, kp = jax.random.split(key, 3)
    # M = 512 rows -> grid of 2 tiles of 256 (even tile count for v7x megacore).
    # For production M, sweep tile_m in 1024-4096 and keep the grid even.
    B, N = 2, 256
    coords = jax.random.uniform(kc, (B, N, 3), jnp.float32, -1.0, 1.0)
    params = init_params(kp, n_of_parts, out_size, hidden_neurons, multires)

    out = mlp3d_final_forward(coords, params, n_of_parts=n_of_parts,
                              multires=multires, use_leaky_relu=use_leaky_relu,
                              tile_m=256, compute_dtype=jnp.bfloat16)
    jax.block_until_ready(out["model_out"])

    ref = ref_forward(coords, params, n_of_parts, multires, use_leaky_relu)

    assert out["model_out"].shape == (B, N, out_size)
    assert out["part_classification"].shape == (B, N, n_of_parts)
    err_occ = float(jnp.max(jnp.abs(out["model_out"] - ref["model_out"])))
    err_cls = float(jnp.max(jnp.abs(out["part_classification"]
                                    - ref["part_classification"])))
    # bf16 MXU operands -> loose tolerance vs the f32 reference
    assert err_occ < 5e-2 and err_cls < 5e-2, (err_occ, err_cls)

    print("KERNEL_OK")
</pallas_src>

<mosaic_0001>
module attributes {stable_mosaic.version = 11 : i64} {
  func.func @kernel(%arg0: i32, %arg1: memref<3x256xf32, #tpu.memory_space<vmem>>, %arg2: memref<30x3xf32, #tpu.memory_space<vmem>>, %arg3: memref<32x3xbf16, #tpu.memory_space<vmem>>, %arg4: memref<32x30xbf16, #tpu.memory_space<vmem>>, %arg5: memref<32x30xbf16, #tpu.memory_space<vmem>>, %arg6: memref<32x1xf32, #tpu.memory_space<vmem>>, %arg7: memref<128x32xbf16, #tpu.memory_space<vmem>>, %arg8: memref<128x1xf32, #tpu.memory_space<vmem>>, %arg9: memref<32x32xbf16, #tpu.memory_space<vmem>>, %arg10: memref<32x1xf32, #tpu.memory_space<vmem>>, %arg11: memref<8x32xbf16, #tpu.memory_space<vmem>>, %arg12: memref<8x96xbf16, #tpu.memory_space<vmem>>, %arg13: memref<8x1xf32, #tpu.memory_space<vmem>>, %arg14: memref<8x256xf32, #tpu.memory_space<vmem>>) attributes {dimension_semantics = [#tpu.dimension_semantics<parallel>], iteration_bounds = array<i64: 2>, scalar_prefetch = 0 : i64, scratch_operands = 0 : i64, tpu.core_type = #tpu.core_type<tc>, window_params = [{transform_indices = @transform_0, window_bounds = array<i64: 3, 256>}, {pipeline_mode = #tpu.pipeline_mode<synchronous>, transform_indices = @transform_1, window_bounds = array<i64: 30, 3>}, {pipeline_mode = #tpu.pipeline_mode<synchronous>, transform_indices = @transform_2, window_bounds = array<i64: 32, 3>}, {pipeline_mode = #tpu.pipeline_mode<synchronous>, transform_indices = @transform_3, window_bounds = array<i64: 32, 30>}, {pipeline_mode = #tpu.pipeline_mode<synchronous>, transform_indices = @transform_4, window_bounds = array<i64: 32, 30>}, {pipeline_mode = #tpu.pipeline_mode<synchronous>, transform_indices = @transform_5, window_bounds = array<i64: 32, 1>}, {pipeline_mode = #tpu.pipeline_mode<synchronous>, transform_indices = @transform_6, window_bounds = array<i64: 128, 32>}, {pipeline_mode = #tpu.pipeline_mode<synchronous>, transform_indices = @transform_7, window_bounds = array<i64: 128, 1>}, {pipeline_mode = #tpu.pipeline_mode<synchronous>, transform_indices = @transform_8, window_bounds = array<i64: 32, 32>}, {pipeline_mode = #tpu.pipeline_mode<synchronous>, transform_indices = @transform_9, window_bounds = array<i64: 32, 1>}, {pipeline_mode = #tpu.pipeline_mode<synchronous>, transform_indices = @transform_10, window_bounds = array<i64: 8, 32>}, {pipeline_mode = #tpu.pipeline_mode<synchronous>, transform_indices = @transform_11, window_bounds = array<i64: 8, 96>}, {pipeline_mode = #tpu.pipeline_mode<synchronous>, transform_indices = @transform_12, window_bounds = array<i64: 8, 1>}, {transform_indices = @transform_13, window_bounds = array<i64: 8, 256>}]} {
    %c0 = arith.constant 0 : index
    %c0_0 = arith.constant 0 : index
    %0 = vector.load %arg1[%c0, %c0_0] : memref<3x256xf32, #tpu.memory_space<vmem>>, vector<3x256xf32>
    %c0_1 = arith.constant 0 : index
    %c0_2 = arith.constant 0 : index
    %1 = vector.load %arg2[%c0_1, %c0_2] : memref<30x3xf32, #tpu.memory_space<vmem>>, vector<30x3xf32>
    %cst = arith.constant dense<0.000000e+00> : vector<30x256xf32>
    %2 = tpu.matmul %1, %0, %cst {dimension_numbers = #tpu.dot_dimension_numbers<[1], [0], [0], [1], [0, 0, 1, 1], [], []>} : vector<30x3xf32>, vector<3x256xf32>, vector<30x256xf32> -> vector<30x256xf32>
    %c0_3 = arith.constant 0 : index
    %c0_4 = arith.constant 0 : index
    %3 = vector.load %arg3[%c0_3, %c0_4] : memref<32x3xbf16, #tpu.memory_space<vmem>>, vector<32x3xbf16>
    %4 = arith.truncf %0 : vector<3x256xf32> to vector<3x256xbf16>
    %cst_5 = arith.constant dense<0.000000e+00> : vector<32x256xf32>
    %5 = tpu.matmul %3, %4, %cst_5 {dimension_numbers = #tpu.dot_dimension_numbers<[1], [0], [0], [1], [0, 0, 1, 1], [], []>} : vector<32x3xbf16>, vector<3x256xbf16>, vector<32x256xf32> -> vector<32x256xf32>
    %c0_6 = arith.constant 0 : index
    %c0_7 = arith.constant 0 : index
    %6 = vector.load %arg4[%c0_6, %c0_7] : memref<32x30xbf16, #tpu.memory_space<vmem>>, vector<32x30xbf16>
    %7 = math.sin %2 : vector<30x256xf32>
    %8 = arith.truncf %7 : vector<30x256xf32> to vector<30x256xbf16>
    %cst_8 = arith.constant dense<0.000000e+00> : vector<32x256xf32>
    %9 = tpu.matmul %6, %8, %cst_8 {dimension_numbers = #tpu.dot_dimension_numbers<[1], [0], [0], [1], [0, 0, 1, 1], [], []>} : vector<32x30xbf16>, vector<30x256xbf16>, vector<32x256xf32> -> vector<32x256xf32>
    %10 = arith.addf %5, %9 : vector<32x256xf32>
    %c0_9 = arith.constant 0 : index
    %c0_10 = arith.constant 0 : index
    %11 = vector.load %arg5[%c0_9, %c0_10] : memref<32x30xbf16, #tpu.memory_space<vmem>>, vector<32x30xbf16>
    %12 = math.cos %2 : vector<30x256xf32>
    %13 = arith.truncf %12 : vector<30x256xf32> to vector<30x256xbf16>
    %cst_11 = arith.constant dense<0.000000e+00> : vector<32x256xf32>
    %14 = tpu.matmul %11, %13, %cst_11 {dimension_numbers = #tpu.dot_dimension_numbers<[1], [0], [0], [1], [0, 0, 1, 1], [], []>} : vector<32x30xbf16>, vector<30x256xbf16>, vector<32x256xf32> -> vector<32x256xf32>
    %15 = arith.addf %10, %14 : vector<32x256xf32>
    %c0_12 = arith.constant 0 : index
    %c0_13 = arith.constant 0 : index
    %16 = vector.load %arg6[%c0_12, %c0_13] : memref<32x1xf32, #tpu.memory_space<vmem>>, vector<32x1xf32>
    %17 = vector.broadcast %16 : vector<32x1xf32> to vector<32x256xf32>
    %18 = arith.addf %15, %17 : vector<32x256xf32>
    %c0_14 = arith.constant 0 : index
    %c0_15 = arith.constant 0 : index
    %19 = vector.load %arg7[%c0_14, %c0_15] : memref<128x32xbf16, #tpu.memory_space<vmem>>, vector<128x32xbf16>
    %20 = arith.truncf %18 : vector<32x256xf32> to vector<32x256xbf16>
    %cst_16 = arith.constant dense<0.000000e+00> : vector<128x256xf32>
    %21 = tpu.matmul %19, %20, %cst_16 {dimension_numbers = #tpu.dot_dimension_numbers<[1], [0], [0], [1], [0, 0, 1, 1], [], []>} : vector<128x32xbf16>, vector<32x256xbf16>, vector<128x256xf32> -> vector<128x256xf32>
    %c0_17 = arith.constant 0 : index
    %c0_18 = arith.constant 0 : index
    %22 = vector.load %arg8[%c0_17, %c0_18] : memref<128x1xf32, #tpu.memory_space<vmem>>, vector<128x1xf32>
    %23 = vector.broadcast %22 : vector<128x1xf32> to vector<128x256xf32>
    %24 = arith.addf %21, %23 : vector<128x256xf32>
    %cst_19 = arith.constant 0.000000e+00 : f32
    %25 = vector.broadcast %cst_19 : f32 to vector<128x256xf32>
    %26 = arith.maximumf %24, %25 : vector<128x256xf32>
    %27 = vector.extract_strided_slice %26 {offsets = [0, 0], sizes = [32, 256], strides = [1, 1]} : vector<128x256xf32> to vector<32x256xf32>
    %c0_20 = arith.constant 0 : index
    %c0_21 = arith.constant 0 : index
    %28 = vector.load %arg9[%c0_20, %c0_21] : memref<32x32xbf16, #tpu.memory_space<vmem>>, vector<32x32xbf16>
    %29 = arith.truncf %27 : vector<32x256xf32> to vector<32x256xbf16>
    %cst_22 = arith.constant dense<0.000000e+00> : vector<32x256xf32>
    %30 = tpu.matmul %28, %29, %cst_22 {dimension_numbers = #tpu.dot_dimension_numbers<[1], [0], [0], [1], [0, 0, 1, 1], [], []>} : vector<32x32xbf16>, vector<32x256xbf16>, vector<32x256xf32> -> vector<32x256xf32>
    %c0_23 = arith.constant 0 : index
    %c0_24 = arith.constant 0 : index
    %31 = vector.load %arg10[%c0_23, %c0_24] : memref<32x1xf32, #tpu.memory_space<vmem>>, vector<32x1xf32>
    %32 = vector.broadcast %31 : vector<32x1xf32> to vector<32x256xf32>
    %33 = arith.addf %30, %32 : vector<32x256xf32>
    %cst_25 = arith.constant 0.000000e+00 : f32
    %34 = vector.broadcast %cst_25 : f32 to vector<32x256xf32>
    %35 = arith.maximumf %33, %34 : vector<32x256xf32>
    %c0_26 = arith.constant 0 : index
    %c0_27 = arith.constant 0 : index
    %36 = vector.load %arg11[%c0_26, %c0_27] : memref<8x32xbf16, #tpu.memory_space<vmem>>, vector<8x32xbf16>
    %37 = arith.truncf %35 : vector<32x256xf32> to vector<32x256xbf16>
    %cst_28 = arith.constant dense<0.000000e+00> : vector<8x256xf32>
    %38 = tpu.matmul %36, %37, %cst_28 {dimension_numbers = #tpu.dot_dimension_numbers<[1], [0], [0], [1], [0, 0, 1, 1], [], []>} : vector<8x32xbf16>, vector<32x256xbf16>, vector<8x256xf32> -> vector<8x256xf32>
    %c0_29 = arith.constant 0 : index
    %c0_30 = arith.constant 0 : index
    %39 = vector.load %arg12[%c0_29, %c0_30] : memref<8x96xbf16, #tpu.memory_space<vmem>>, vector<8x96xbf16>
    %40 = vector.extract_strided_slice %26 {offsets = [32, 0], sizes = [96, 256], strides = [1, 1]} : vector<128x256xf32> to vector<96x256xf32>
    %41 = arith.truncf %40 : vector<96x256xf32> to vector<96x256xbf16>
    %cst_31 = arith.constant dense<0.000000e+00> : vector<8x256xf32>
    %42 = tpu.matmul %39, %41, %cst_31 {dimension_numbers = #tpu.dot_dimension_numbers<[1], [0], [0], [1], [0, 0, 1, 1], [], []>} : vector<8x96xbf16>, vector<96x256xbf16>, vector<8x256xf32> -> vector<8x256xf32>
    %43 = arith.addf %38, %42 : vector<8x256xf32>
    %c0_32 = arith.constant 0 : index
    %c0_33 = arith.constant 0 : index
    %44 = vector.load %arg13[%c0_32, %c0_33] : memref<8x1xf32, #tpu.memory_space<vmem>>, vector<8x1xf32>
    %45 = vector.broadcast %44 : vector<8x1xf32> to vector<8x256xf32>
    %46 = arith.addf %43, %45 : vector<8x256xf32>
    %c0_34 = arith.constant 0 : index
    %c0_35 = arith.constant 0 : index
    %47 = vector.load %arg14[%c0_34, %c0_35] : memref<8x256xf32, #tpu.memory_space<vmem>>, vector<8x256xf32>
    tpu.vector_store %arg14[%c0_34, %c0_35], %46 {strides = array<i32>} : memref<8x256xf32, #tpu.memory_space<vmem>>, vector<8x256xf32>,
    return
  }
  func.func @transform_0(%arg0: i32) -> (i32, i32) {
    %c0_i32 = arith.constant 0 : i32
    %c0_i32_0 = arith.constant 0 : i32
    return %c0_i32, %arg0 : i32, i32
  }
  func.func @transform_1(%arg0: i32) -> (i32, i32) {
    %c0_i32 = arith.constant 0 : i32
    %c0_i32_0 = arith.constant 0 : i32
    %c0_i32_1 = arith.constant 0 : i32
    return %c0_i32, %c0_i32_0 : i32, i32
  }
  func.func @transform_2(%arg0: i32) -> (i32, i32) {
    %c0_i32 = arith.constant 0 : i32
    %c0_i32_0 = arith.constant 0 : i32
    %c0_i32_1 = arith.constant 0 : i32
    return %c0_i32, %c0_i32_0 : i32, i32
  }
  func.func @transform_3(%arg0: i32) -> (i32, i32) {
    %c0_i32 = arith.constant 0 : i32
    %c0_i32_0 = arith.constant 0 : i32
    %c0_i32_1 = arith.constant 0 : i32
    return %c0_i32, %c0_i32_0 : i32, i32
  }
  func.func @transform_4(%arg0: i32) -> (i32, i32) {
    %c0_i32 = arith.constant 0 : i32
    %c0_i32_0 = arith.constant 0 : i32
    %c0_i32_1 = arith.constant 0 : i32
    return %c0_i32, %c0_i32_0 : i32, i32
  }
  func.func @transform_5(%arg0: i32) -> (i32, i32) {
    %c0_i32 = arith.constant 0 : i32
    %c0_i32_0 = arith.constant 0 : i32
    %c0_i32_1 = arith.constant 0 : i32
    return %c0_i32, %c0_i32_0 : i32, i32
  }
  func.func @transform_6(%arg0: i32) -> (i32, i32) {
    %c0_i32 = arith.constant 0 : i32
    %c0_i32_0 = arith.constant 0 : i32
    %c0_i32_1 = arith.constant 0 : i32
    return %c0_i32, %c0_i32_0 : i32, i32
  }
  func.func @transform_7(%arg0: i32) -> (i32, i32) {
    %c0_i32 = arith.constant 0 : i32
    %c0_i32_0 = arith.constant 0 : i32
    %c0_i32_1 = arith.constant 0 : i32
    return %c0_i32, %c0_i32_0 : i32, i32
  }
  func.func @transform_8(%arg0: i32) -> (i32, i32) {
    %c0_i32 = arith.constant 0 : i32
    %c0_i32_0 = arith.constant 0 : i32
    %c0_i32_1 = arith.constant 0 : i32
    return %c0_i32, %c0_i32_0 : i32, i32
  }
  func.func @transform_9(%arg0: i32) -> (i32, i32) {
    %c0_i32 = arith.constant 0 : i32
    %c0_i32_0 = arith.constant 0 : i32
    %c0_i32_1 = arith.constant 0 : i32
    return %c0_i32, %c0_i32_0 : i32, i32
  }
  func.func @transform_10(%arg0: i32) -> (i32, i32) {
    %c0_i32 = arith.constant 0 : i32
    %c0_i32_0 = arith.constant 0 : i32
    %c0_i32_1 = arith.constant 0 : i32
    return %c0_i32, %c0_i32_0 : i32, i32
  }
  func.func @transform_11(%arg0: i32) -> (i32, i32) {
    %c0_i32 = arith.constant 0 : i32
    %c0_i32_0 = arith.constant 0 : i32
    %c0_i32_1 = arith.constant 0 : i32
    return %c0_i32, %c0_i32_0 : i32, i32
  }
  func.func @transform_12(%arg0: i32) -> (i32, i32) {
    %c0_i32 = arith.constant 0 : i32
    %c0_i32_0 = arith.constant 0 : i32
    %c0_i32_1 = arith.constant 0 : i32
    return %c0_i32, %c0_i32_0 : i32, i32
  }
  func.func @transform_13(%arg0: i32) -> (i32, i32) {
    %c0_i32 = arith.constant 0 : i32
    %c0_i32_0 = arith.constant 0 : i32
    return %c0_i32, %arg0 : i32, i32
  }
}

</mosaic_0001>

<bundles_post_ra>
// kernel: mlp3d_final_forward.1
= control target key start
LH: loop header
LB: loop body
LE: loop exit
PB: predicated region body
PF: predicated region fallthrough
CT: control target
= control target key end

     0   :  { %s3438_s25 = smov 0   ;;  %s4472_s0 = inlined_call_operand.vmem [shape: f32[3,512], index: 0, kind: input, shape index: {}]   ;;  %s4473_s1 = inlined_call_operand.vmem [shape: f32[30,3], index: 1, kind: input, shape index: {}]   ;;  %s4474_s2 = inlined_call_operand.vmem [shape: bf16[32,3], index: 2, kind: input, shape index: {}]   ;;  %s4475_s3 = inlined_call_operand.vmem [shape: bf16[32,30], index: 3, kind: input, shape index: {}]   ;;  %s4476_s4 = inlined_call_operand.vmem [shape: bf16[32,30], index: 4, kind: input, shape index: {}]   ;;  %s4477_s5 = inlined_call_operand.vmem [shape: f32[32,1], index: 5, kind: input, shape index: {}]   ;;  %s4478_s6 = inlined_call_operand.vmem [shape: bf16[128,32], index: 6, kind: input, shape index: {}]   ;;  %s4479_s7 = inlined_call_operand.vmem [shape: f32[128,1], index: 7, kind: input, shape index: {}]   ;;  %s4480_s8 = inlined_call_operand.vmem [shape: bf16[32,32], index: 8, kind: input, shape index: {}]   ;;  %s4481_s9 = inlined_call_operand.vmem [shape: f32[32,1], index: 9, kind: input, shape index: {}]   ;;  %s4482_s10 = inlined_call_operand.vmem [shape: bf16[8,32], index: 10, kind: input, shape index: {}]   ;;  %s4483_s11 = inlined_call_operand.vmem [shape: bf16[8,96], index: 11, kind: input, shape index: {}]   ;;  %s4484_s12 = inlined_call_operand.vmem [shape: f32[8,1], index: 12, kind: input, shape index: {}]   ;;  %s4485_s13 = inlined_call_operand.vmem [shape: f32[8,512], index: 13, kind: output, shape index: {}]  }
   0x1 LB: > { %s3117_s26 = sadd.s32 4294967295, %s3357_s25   ;;  %p3121_p0 = scmp.ge.s32.totalorder %s3357_s25, 1  ;;  %s3357_s25 = sphi %s3438_s25, %s23_s25  }
   0x2   : > { %p388_p1 = scmp.lt.s32.totalorder %s3357_s25, 3 }
   0x4   : > { %p389_p2 = pnand %p3121_p0, %p388_p1 }
   0x5   : > { %s3122_s27 = sshll.u32 (!%p389_p2), %s3117_s26, 1  ;;  %v3359_v0 = vmov (!%p389_p2), 0.0   ;;  %vm465_vm0 = vcmask (!%p389_p2), 1042432   ;;  %vm452_vm1 = vcmask (!%p389_p2), 23552   ;;  %v446_v2 = vld [vmem:[%s4473_s1] sm:$0xff] (!%p389_p2)  ;;  %v447_v4 = vld [vmem:[%s4473_s1 + $0x8] sm:$0xff] (!%p389_p2) }
   0x6   : > { %392 = sbr.rel (%p389_p2) target bundleno = 1408 (0x580), region = 72  ;;  %p433_p3 = scmp.lt.s32.totalorder (!%p389_p2), %s3122_s27, 3  ;;  %534 = vmatprep.mubr.f32.mxu0 (!%p389_p2), %v3359_v0  ;;  %v448_v5 = vld [vmem:[%s4473_s1 + $0x10] sm:$0xff] (!%p389_p2)  ;;  %v449_v6 = vld [vmem:[%s4473_s1 + $0x18] sm:$0x3f] (!%p389_p2) }
   0x7   : > { %v3360_v40 = vmov (!%p389_p2), 683565275   ;;  %v3361_v45 = vmov (!%p389_p2), 2475754826   ;;  %v3362_v47 = vmov (!%p389_p2), 2131351028  }
   0x8   : > { %v3363_v49 = vmov (!%p389_p2), 2102212464   ;;  %v3364_v51 = vmov (!%p389_p2), 920167782   ;;  %v3365_v58 = vmov (!%p389_p2), 1326507024  }
   0xd   : > { %s4506_s27 = smov (!%p433_p3, %s3122_s27), 3 }
   0xe   : > { %s3123_s28 = sshll.u32 %s4506_s27, 2  ;;  %s3125_s19 = sshll.u32 %s4506_s27, 3 }
   0xf   : > { %s3452_s14 = scalar_lea.vmem %s4472_s0, %s3123_s28  ;;  %s442_s22 = scalar_lea.vmem %s4485_s13, %s3125_s19 }
  0x10   : > { %v445_v1 = vld [vmem:[%s3452_s14] sm:$0x77] }
  0x11   : > { %v3458_v3 = vcombine.high %v445_v1, %v445_v1 }
  0x13   : > { %3126 = vmatprep.subr.msk.mxu0 %vm465_vm0, %v3458_v3 }
  0x14   : > { %3127 = vmatpush1.msk.msra.mxu0 %vm465_vm0, %v445_v1 }
  0x15   : > { %3128 = vmatmul.mubr.msk.f32.vlgmr.msra.gmra.mrb[0].mxu0 %vm452_vm1, %v446_v2 }
  0x16   : > { %540 = vmatprep.mubr.f32.mxu0 %v3359_v0 }
  0x19   : > { %3129 = vmatmul.mubr.msk.f32.gmra.mrb[2].mxu0 %vm452_vm1, %v447_v4 }
  0x1a   : > { %546 = vmatprep.mubr.f32.mxu0 %v3359_v0 }
  0x1d   : > { %3130 = vmatmul.mubr.msk.f32.gmra.mrb[4].mxu0 %vm452_vm1, %v448_v5 }
  0x1e   : > { %552 = vmatprep.mubr.f32.mxu0 %v3359_v0 }
  0x21   : > { %3131 = vmatmul.mubr.msk.f32.gmra.mrb[6].mxu0 %vm452_vm1, %v449_v6 }
  0xe8   : > { %v3474_v7 = vpop.f32.mrb[0].mxu0 }
  0xe9   : > { %v570_v8 = vand.u32 2147483647, %v3474_v7  ;;  %v573_v9 = vand.u32 2139095040, %v3474_v7  ;;  %v3478_v10 = vpop.f32.mrb[1].mxu0 }
  0xea   : > { %v674_v11 = vand.u32 2147483647, %v3478_v10  ;;  %v677_v12 = vand.u32 2139095040, %v3478_v10 }
  0xeb   : > { %v574_v13 = vshrl.u32 %v573_v9, 23  ;;  %v577_v14 = vand.u32 8388607, %v570_v8 }
  0xec   : > { %v678_v15 = vshrl.u32 %v677_v12, 23  ;;  %v681_v16 = vand.u32 8388607, %v674_v11  ;;  %v3486_v17 = vpop.f32.mrb[2].mxu0 }
  0xed   : > { %v3132_v18 = vadd.s32 4294967169, %v574_v13  ;;  %v3488_v19 = vpop.f32.mrb[3].mxu0  ;;  %v781_v21 = vand.u32 2139095040, %v3486_v17  ;;  %v578_v23 = vor.u32 8388608, %v577_v14  ;;  %v778_v37 = vand.u32 2147483647, %v3486_v17 }
  0xee   : > { %v3136_v20 = vadd.s32 4294967169, %v678_v15  ;;  %v682_v24 = vor.u32 8388608, %v681_v16 }
  0xef   : > { %v580_v22 = vadd.s32 1, %v3132_v18  ;;  %v782_v26 = vshrl.u32 %v781_v21, 23  ;;  %v3495_v34 = vshll.u32 %v578_v23, 8 }
  0xf0   : > { %v684_v25 = vadd.s32 1, %v3136_v20  ;;  %v3491_v27 = vpop.f32.mrb[4].mxu0  ;;  %v3499_v36 = vshll.u32 %v682_v24, 8 }
  0xf1   : > { %vm581_vm2 = vcmp.gt.s32.totalorder %v580_v22, 0  ;;  %v3493_v28 = vpop.f32.mrb[5].mxu0  ;;  %v3140_v30 = vadd.s32 4294967169, %v782_v26 }
  0xf2   : > { %v582_v29 = vsel %vm581_vm2, %v580_v22, 0  ;;  %vm685_vm3 = vcmp.gt.s32.totalorder %v684_v25, 0 }
  0xf3   : > { %v583_v31 = vshrl.u32 %v582_v29, 5  ;;  %v584_v32 = vand.u32 31, %v582_v29  ;;  %v686_v33 = vsel %vm685_vm3, %v684_v25, 0  ;;  %v3505_v43 = vadd.s32 1, %v3140_v30 }
  0xf4   : > { %v3497_v35 = vshrl.u32 %v686_v33, 5  ;;  %v3502_v38 = vpop.f32.mrb[6].mxu0  ;;  %v688_v42 = vand.u32 31, %v686_v33 }
  0xf5   : > { %v585_v39 = vsub.s32 32, %v584_v32  ;;  %v587_v41 = vshll.u32 %v3360_v40, %v584_v32  ;;  %v3507_v44 = vpop.f32.mrb[7].mxu0  ;;  %v590_v46 = vshll.u32 %v3361_v45, %v584_v32  ;;  %v593_v48 = vshll.u32 %v3362_v47, %v584_v32 }
  0xf6   : > { %v596_v50 = vshll.u32 %v3363_v49, %v584_v32  ;;  %v599_v52 = vshll.u32 %v3364_v51, %v584_v32  ;;  %vm602_vm4 = vcmp.lt.s32.totalorder %v583_v31, 1  ;;  %vm603_vm5 = vcmp.lt.s32.totalorder %v583_v31, 2 }
  0xf7   : > { %v588_v53 = vshrl.u32 %v3361_v45, %v585_v39  ;;  %v591_v54 = vshrl.u32 %v3362_v47, %v585_v39  ;;  %v594_v55 = vshrl.u32 %v3363_v49, %v585_v39  ;;  %v586_v56 = vshrl.u32 %v3360_v40, %v585_v39 }
  0xf8   : > { %v597_v57 = vshrl.u32 %v3364_v51, %v585_v39  ;;  %v600_v59 = vshrl.u32 %v3365_v58, %v585_v39  ;;  %v689_v63 = vsub.s32 32, %v688_v42  ;;  %vm604_vm6 = vcmp.lt.s32.totalorder %v583_v31, 3 }
  0xf9   : > { %v589_v60 = vor.u32 %v588_v53, %v587_v41  ;;  %v592_v61 = vor.u32 %v591_v54, %v590_v46  ;;  %v595_v62 = vor.u32 %v594_v55, %v593_v48  ;;  %vm605_vm7 = vcmp.lt.s32.totalorder %v583_v31, 4 }
  0xfa   : > { %v598_v0 = vor.u32 %v597_v57, %v596_v50  ;;  %v601_v1 = vor.u32 %v600_v59, %v599_v52  ;;  %v691_v14 = vshll.u32 %v3360_v40, %v688_v42  ;;  %v692_v18 = vshrl.u32 %v3361_v45, %v689_v63 }
  0xfb   : > { %v606_v2 = vsel %vm602_vm4, %v586_v56, %v589_v60  ;;  %v607_v4 = vsel %vm605_vm7, %v595_v62, 2102212464  ;;  %v610_v5 = vsel %vm602_vm4, %v589_v60, %v592_v61  ;;  %v614_v6 = vsel %vm602_vm4, %v592_v61, %v595_v62 }
  0xfc   : > { %v608_v9 = vsel %vm604_vm6, %v592_v61, %v607_v4  ;;  %v611_v12 = vsel %vm605_vm7, %v598_v0, 920167782  ;;  %v615_v13 = vsel %vm605_vm7, %v601_v1, 1326507024  ;;  %v694_v20 = vshll.u32 %v3361_v45, %v688_v42 }
  0xfd   : > { %v612_v15 = vsel %vm604_vm6, %v595_v62, %v611_v12  ;;  %v616_v16 = vsel %vm604_vm6, %v598_v0, %v615_v13  ;;  %v609_v21 = vsel %vm603_vm5, %v606_v2, %v608_v9  ;;  %v695_v24 = vshrl.u32 %v3362_v47, %v689_v63 }
  0xfe   : > { %v613_v22 = vsel %vm603_vm5, %v610_v5, %v612_v15  ;;  %v617_v23 = vsel %vm603_vm5, %v614_v6, %v616_v16  ;;  %v693_v32 = vor.u32 %v692_v18, %v691_v14  ;;  %v697_v39 = vshll.u32 %v3362_v47, %v688_v42 }
  0xff   : > { %v3530_v25 = vmul.u32.u64.low %v3495_v34, %v617_v23  ;;  %v3531_v26 = vmul.u32.u64.high %v3495_v34, %v617_v23, %v3530_v25  ;;  %v3534_v29 = vmul.u32.u64.low %v3495_v34, %v613_v22  ;;  %v3535_v30 = vmul.u32.u64.high %v3495_v34, %v613_v22, %v3534_v29 }
 0x100   : > { %v696_v33 = vor.u32 %v695_v24, %v694_v20  ;;  %v698_v41 = vshrl.u32 %v3363_v49, %v689_v63  ;;  %v690_v31 = vshrl.u32 %v3360_v40, %v689_v63  ;;  %v700_v46 = vshll.u32 %v3363_v49, %v688_v42 }
 0x101   : > { %v701_v48 = vshrl.u32 %v3364_v51, %v689_v63  ;;  %v704_v50 = vshrl.u32 %v3365_v58, %v689_v63  ;;  %v625_v52 = vmul.u32 %v3495_v34, %v609_v21  ;;  %v703_v54 = vshll.u32 %v3364_v51, %v688_v42 }
 0x102   : > { %v699_v53 = vor.u32 %v698_v41, %v697_v39  ;;  %vm706_vm8 = vcmp.lt.s32.totalorder %v3497_v35, 1  ;;  %vm627_vm9 = vc.u32 %v3531_v26, %v3534_v29  ;;  %v628_v55 = vadd.s32 1, %v3535_v30 }
 0x103   : > { %v702_v56 = vor.u32 %v701_v48, %v700_v46  ;;  %vm707_vm10 = vcmp.lt.s32.totalorder %v3497_v35, 2  ;;  %v705_v57 = vor.u32 %v704_v50, %v703_v54  ;;  %vm708_vm11 = vcmp.lt.s32.totalorder %v3497_v35, 3 }
 0x104   : > { %vm709_vm12 = vcmp.lt.s32.totalorder %v3497_v35, 4  ;;  %v714_v59 = vsel %vm706_vm8, %v693_v32, %v696_v33  ;;  %v629_v34 = vsel %vm627_vm9, %v628_v55, %v3535_v30  ;;  %v718_v61 = vsel %vm706_vm8, %v696_v33, %v699_v53 }
 0x105   : > { %v711_v60 = vsel %vm709_vm12, %v699_v53, 2102212464  ;;  %v715_v42 = vsel %vm709_vm12, %v702_v56, 920167782  ;;  %v630_v62 = vadd.s32 %v629_v34, %v625_v52  ;;  %v710_v63 = vsel %vm706_vm8, %v690_v31, %v693_v32 }
 0x106   : > { %v716_v0 = vsel %vm708_vm11, %v699_v53, %v715_v42  ;;  %v719_v1 = vsel %vm709_vm12, %v705_v57, 1326507024  ;;  %v712_v2 = vsel %vm708_vm11, %v696_v33, %v711_v60  ;;  %vm789_vm13 = vcmp.gt.s32.totalorder %v3505_v43, 0 }
 0x107   : > { %v717_v4 = vsel %vm707_vm10, %v714_v59, %v716_v0  ;;  %v720_v5 = vsel %vm708_vm11, %v702_v56, %v719_v1  ;;  %v631_v6 = vadd.s32 536870912, %v630_v62  ;;  %v785_v16 = vand.u32 8388607, %v778_v37 }
 0x108   : > { %v721_v9 = vsel %vm707_vm10, %v718_v61, %v720_v5  ;;  %v3560_v12 = vmul.u32.u64.low %v3499_v36, %v717_v4  ;;  %v3561_v13 = vmul.u32.u64.high %v3499_v36, %v717_v4, %v3560_v12  ;;  %v790_v18 = vsel %vm789_vm13, %v3505_v43, 0 }
 0x109   : > { %v3565_v14 = vmul.u32.u64.low %v3499_v36, %v721_v9  ;;  %v3566_v15 = vmul.u32.u64.high %v3499_v36, %v721_v9, %v3565_v14  ;;  %v3571_v20 = vshrl.u32 %v631_v6, 30  ;;  %v713_v21 = vsel %vm707_vm10, %v710_v63, %v712_v2 }
 0x10a   : > { %v792_v22 = vand.u32 31, %v790_v18  ;;  %v885_v23 = vand.u32 2139095040, %v3488_v19  ;;  %v732_v25 = vadd.s32 1, %v3561_v13  ;;  %v729_v32 = vmul.u32 %v3499_v36, %v713_v21 }
 0x10b   : > { %v633_v24 = vshll.u32 %v3571_v20, 30  ;;  %vm731_vm14 = vc.u32 %v3566_v15, %v3560_v12  ;;  %v786_v33 = vor.u32 8388608, %v785_v16  ;;  %v791_v35 = vshrl.u32 %v790_v18, 5 }
 0x10c   : > { %v793_v30 = vsub.s32 32, %v792_v22  ;;  %v733_v39 = vsel %vm731_vm14, %v732_v25, %v3561_v13  ;;  %v886_v41 = vshrl.u32 %v885_v23, 23  ;;  %v795_v46 = vshll.u32 %v3360_v40, %v792_v22 }
 0x10d   : > { %v3581_v43 = vsub.s32 %v630_v62, %v633_v24  ;;  %v734_v31 = vadd.s32 %v733_v39, %v729_v32  ;;  %v798_v36 = vshll.u32 %v3361_v45, %v792_v22  ;;  %v801_v53 = vshll.u32 %v3362_v47, %v792_v22 }
 0x10e   : > { %v796_v48 = vshrl.u32 %v3361_v45, %v793_v30  ;;  %v799_v50 = vshrl.u32 %v3362_v47, %v793_v30  ;;  %v802_v54 = vshrl.u32 %v3363_v49, %v793_v30  ;;  %v804_v57 = vshll.u32 %v3363_v49, %v792_v22 }
 0x10f   : > { %v636_v52 = vsub.s32 0, %v3581_v43  ;;  %v735_v55 = vadd.s32 536870912, %v734_v31  ;;  %v805_v59 = vshrl.u32 %v3364_v51, %v793_v30  ;;  %v807_v42 = vshll.u32 %v3364_v51, %v792_v22 }
 0x110   : > { %v797_v56 = vor.u32 %v796_v48, %v795_v46  ;;  %v800_v60 = vor.u32 %v799_v50, %v798_v36  ;;  %v808_v61 = vshrl.u32 %v3365_v58, %v793_v30  ;;  %v803_v63 = vor.u32 %v802_v54, %v801_v53 }
 0x111   : > { %v3133_v34 = vmin.u32 %v636_v52, %v3581_v43  ;;  %v3596_v62 = vshrl.u32 %v735_v55, 30  ;;  %v806_v0 = vor.u32 %v805_v59, %v804_v57  ;;  %v826_v4 = vshll.u32 %v786_v33, 8 }
 0x112   : > { %v809_v2 = vor.u32 %v808_v61, %v807_v42  ;;  %v882_v5 = vand.u32 2147483647, %v3488_v19  ;;  %vm810_vm15 = vcmp.lt.s32.totalorder %v791_v35, 1  ;;  %vm813_vm0 = vcmp.lt.s32.totalorder %v791_v35, 4 }
 0x113   : > { %v638_v1 = vclz %v3133_v34  ;;  %v737_v6 = vshll.u32 %v3596_v62, 30  ;;  %v3144_v9 = vadd.s32 4294967169, %v886_v41  ;;  %vm812_vm2 = vcmp.lt.s32.totalorder %v791_v35, 3 }
 0x114   : > { %v818_v14 = vsel %vm810_vm15, %v797_v56, %v800_v60  ;;  %v819_v16 = vsel %vm813_vm0, %v806_v0, 920167782  ;;  %v794_v21 = vshrl.u32 %v3360_v40, %v793_v30  ;;  %v815_v22 = vsel %vm813_vm0, %v803_v63, 2102212464 }
 0x115   : > { %v3134_v13 = vadd.s32 4294967294, %v638_v1  ;;  %v3601_v18 = vsub.s32 %v734_v31, %v737_v6  ;;  %v820_v23 = vsel %vm812_vm2, %v803_v63, %v819_v16  ;;  %vm811_vm4 = vcmp.lt.s32.totalorder %v791_v35, 2 }
 0x116   : > { %v822_v24 = vsel %vm810_vm15, %v800_v60, %v803_v63  ;;  %v823_v25 = vsel %vm813_vm0, %v809_v2, 1326507024  ;;  %v821_v39 = vsel %vm811_vm4, %v818_v14, %v820_v23  ;;  %v814_v31 = vsel %vm810_vm15, %v794_v21, %v797_v56 }
 0x117   : > { %vm3135_vm3 = vcmp.lt.s32.totalorder %v3134_v13, 0  ;;  %v740_v33 = vsub.s32 0, %v3601_v18  ;;  %v824_v41 = vsel %vm812_vm2, %v806_v0, %v823_v25  ;;  %v816_v30 = vsel %vm812_vm2, %v800_v60, %v815_v22 }
 0x118   : > { %v641_v32 = vsel %vm3135_vm3, 0, %v3134_v13  ;;  %v825_v48 = vsel %vm811_vm4, %v822_v24, %v824_v41  ;;  %v892_v53 = vadd.s32 1, %v3144_v9  ;;  %v889_v57 = vand.u32 8388607, %v882_v5 }
 0x119   : > { %v646_v46 = vsub.s32 4294967266, %v641_v32  ;;  %v3137_v50 = vmin.u32 %v740_v33, %v3601_v18  ;;  %v3613_v52 = vmul.u32.u64.low %v826_v4, %v825_v48  ;;  %v3614_v36 = vmul.u32.u64.high %v826_v4, %v825_v48, %v3613_v52 }
 0x11a   : > { %v3616_v54 = vmul.u32.u64.low %v826_v4, %v821_v39  ;;  %v3617_v55 = vmul.u32.u64.high %v826_v4, %v821_v39, %v3616_v54  ;;  %v642_v59 = vsub.s32 32, %v641_v32  ;;  %vm893_vm5 = vcmp.gt.s32.totalorder %v892_v53, 0 }
 0x11b   : > { %v647_v34 = vadd.s32 127, %v646_v46  ;;  %v742_v56 = vclz %v3137_v50  ;;  %v817_v60 = vsel %vm811_vm4, %v814_v31, %v816_v30  ;;  %v894_v42 = vsel %vm893_vm5, %v892_v53, 0 }
 0x11c   : > { %v626_v61 = vadd.s32 %v3534_v29, %v3531_v26  ;;  %vm835_vm6 = vc.u32 %v3614_v36, %v3616_v54  ;;  %v836_v0 = vadd.s32 1, %v3617_v55  ;;  %v890_v1 = vor.u32 8388608, %v889_v57 }
 0x11d   : > { %v3138_v63 = vadd.s32 4294967294, %v742_v56  ;;  %v896_v2 = vand.u32 31, %v894_v42  ;;  %v648_v9 = vshll.u32 %v647_v34, 23  ;;  %v833_v13 = vmul.u32 %v826_v4, %v817_v60 }
 0x11e   : > { %v644_v6 = vshrl.u32 %v626_v61, %v642_v59  ;;  %v837_v35 = vsel %vm835_vm6, %v836_v0, %v3617_v55  ;;  %v989_v21 = vand.u32 2139095040, %v3491_v27  ;;  %v643_v26 = vshll.u32 %v3581_v43, %v641_v32 }
 0x11f   : > { %vm3139_vm7 = vcmp.lt.s32.totalorder %v3138_v63, 0  ;;  %v897_v16 = vsub.s32 32, %v896_v2  ;;  %v838_v22 = vadd.s32 %v837_v35, %v833_v13  ;;  %v730_v23 = vadd.s32 %v3560_v12, %v3566_v15 }
 0x120   : > { %v745_v14 = vsel %vm3139_vm7, 0, %v3138_v63  ;;  %v986_v24 = vand.u32 2147483647, %v3491_v27  ;;  %v645_v25 = vor.u32 %v644_v6, %v643_v26  ;;  %v649_v33 = vor.u32 4788187, %v648_v9 }
 0x121   : > { %v750_v29 = vsub.s32 4294967266, %v745_v14  ;;  %v839_v39 = vadd.s32 536870912, %v838_v22  ;;  %v3634_v41 = vshll.u32 %v890_v1, 8  ;;  %v895_v4 = vshrl.u32 %v894_v42, 5 }
 0x122   : > { %v900_v46 = vshrl.u32 %v3361_v45, %v897_v16  ;;  %v903_v31 = vshrl.u32 %v3362_v47, %v897_v16  ;;  %v990_v30 = vshrl.u32 %v989_v21, 23  ;;  %v746_v48 = vsub.s32 32, %v745_v14 }
 0x123   : > { %v751_v43 = vadd.s32 127, %v750_v29  ;;  %v3638_v32 = vshrl.u32 %v839_v39, 30  ;;  %v906_v50 = vshrl.u32 %v3363_v49, %v897_v16  ;;  %v899_v12 = vshll.u32 %v3360_v40, %v896_v2 }
 0x124   : > { %v902_v15 = vshll.u32 %v3361_v45, %v896_v2  ;;  %v908_v52 = vshll.u32 %v3363_v49, %v896_v2  ;;  %v909_v53 = vshrl.u32 %v3364_v51, %v897_v16  ;;  %v650_v55 = vand.u32 2147483647, %v649_v33 }
 0x125   : > { %v652_v57 = vcvt.s32.f32 %v645_v25  ;;  %v841_v59 = vshll.u32 %v3638_v32, 30  ;;  %v905_v34 = vshll.u32 %v3362_v47, %v896_v2  ;;  %v901_v56 = vor.u32 %v900_v46, %v899_v12 }
 0x126   : > { %v904_v60 = vor.u32 %v903_v31, %v902_v15  ;;  %v910_v42 = vor.u32 %v909_v53, %v908_v52  ;;  %vm914_vm8 = vcmp.lt.s32.totalorder %v895_v4, 1  ;;  %v752_v61 = vshll.u32 %v751_v43, 23 }
 0x127   : > { %v3647_v63 = vsub.s32 %v838_v22, %v841_v59  ;;  %v907_v0 = vor.u32 %v906_v50, %v905_v34  ;;  %vm915_vm9 = vcmp.lt.s32.totalorder %v895_v4, 2  ;;  %v748_v1 = vshrl.u32 %v730_v23, %v746_v48 }
 0x128   : > { %v911_v6 = vshll.u32 %v3364_v51, %v896_v2  ;;  %v912_v9 = vshrl.u32 %v3365_v58, %v897_v16  ;;  %vm916_vm10 = vcmp.lt.s32.totalorder %v895_v4, 3  ;;  %v653_v13 = vmul.f32 %v652_v57, %v650_v55 }
 0x129   : > { %v747_v35 = vshll.u32 %v3601_v18, %v745_v14  ;;  %v844_v21 = vsub.s32 0, %v3647_v63  ;;  %vm917_vm11 = vcmp.lt.s32.totalorder %v895_v4, 4  ;;  %v898_v26 = vshrl.u32 %v3360_v40, %v897_v16 }
 0x12a   : > { %v913_v29 = vor.u32 %v912_v9, %v911_v6  ;;  %v922_v22 = vsel %vm914_vm8, %v901_v56, %v904_v60  ;;  %v923_v25 = vsel %vm917_vm11, %v910_v42, 920167782  ;;  %v753_v33 = vor.u32 4788187, %v752_v61 }
 0x12b   : > { %v3141_v23 = vmin.u32 %v844_v21, %v3647_v63  ;;  %v919_v39 = vsel %vm917_vm11, %v907_v0, 2102212464  ;;  %v924_v2 = vsel %vm916_vm10, %v907_v0, %v923_v25  ;;  %v749_v46 = vor.u32 %v748_v1, %v747_v35 }
 0x12c   : > { %v925_v31 = vsel %vm915_vm9, %v922_v22, %v924_v2  ;;  %v926_v18 = vsel %vm914_vm8, %v904_v60, %v907_v0  ;;  %v927_v14 = vsel %vm917_vm11, %v913_v29, 1326507024  ;;  %v918_v43 = vsel %vm914_vm8, %v898_v26, %v901_v56 }
 0x12d   : > { %v846_v48 = vclz %v3141_v23  ;;  %v928_v16 = vsel %vm916_vm10, %v910_v42, %v927_v14  ;;  %v3148_v50 = vadd.s32 4294967169, %v990_v30  ;;  %v920_v12 = vsel %vm916_vm10, %v904_v60, %v919_v39 }
 0x12e   : > { %v929_v15 = vsel %vm915_vm9, %v926_v18, %v928_v16  ;;  %v3664_v52 = vmul.u32.u64.low %v3634_v41, %v925_v31  ;;  %v3665_v53 = vmul.u32.u64.high %v3634_v41, %v925_v31, %v3664_v52  ;;  %v754_v55 = vand.u32 2147483647, %v753_v33 }
 0x12f   : > { %v3142_v57 = vadd.s32 4294967294, %v846_v48  ;;  %v3669_v59 = vmul.u32.u64.low %v3634_v41, %v929_v15  ;;  %v3670_v34 = vmul.u32.u64.high %v3634_v41, %v929_v15, %v3669_v59  ;;  %v654_v61 = vxor.u32 2147483648, %v653_v13 }
 0x130   : > { %v996_v56 = vadd.s32 1, %v3148_v50  ;;  %v756_v0 = vcvt.s32.f32 %v749_v46  ;;  %v921_v30 = vsel %vm915_vm9, %v918_v43, %v920_v12  ;;  %v993_v60 = vand.u32 8388607, %v986_v24 }
 0x131   : > { %vm3143_vm12 = vcmp.lt.s32.totalorder %v3142_v57, 0  ;;  %v656_v42 = vsub.s32 4, %v3571_v20  ;;  %v940_v6 = vadd.s32 1, %v3665_v53  ;;  %vm3679_vm14 = vcmp.le.f32.partialorder %v570_v8, 0.7853982 }
 0x132   : > { %v849_v1 = vsel %vm3143_vm12, 0, %v3142_v57  ;;  %vm997_vm13 = vcmp.gt.s32.totalorder %v996_v56, 0  ;;  %vm572_vm15 = vcmp.lt.s32.totalorder %v3474_v7, 0  ;;  %v3684_v35 = vmul.f32 %v756_v0, %v754_v55 }
 0x133   : > { %v854_v4 = vsub.s32 4294967266, %v849_v1  ;;  %v655_v21 = vsel %vm572_vm15, %v654_v61, %v653_v13  ;;  %v937_v26 = vmul.u32 %v3634_v41, %v921_v30  ;;  %vm939_vm0 = vc.u32 %v3670_v34, %v3664_v52 }
 0x134   : > { %v998_v29 = vsel %vm997_vm13, %v996_v56, 0  ;;  %v850_v22 = vsub.s32 32, %v849_v1  ;;  %v941_v33 = vsel %vm939_vm0, %v940_v6, %v3665_v53  ;;  %v994_v8 = vor.u32 8388608, %v993_v60 }
 0x135   : > { %v855_v25 = vadd.s32 127, %v854_v4  ;;  %v3691_v23 = vsel %vm572_vm15, %v656_v42, %v3571_v20  ;;  %v760_v39 = vsub.s32 4, %v3596_v62  ;;  %v942_v2 = vadd.s32 %v941_v33, %v937_v26 }
 0x136   : > { %v1000_v46 = vand.u32 31, %v998_v29  ;;  %v3697_v41 = vsel %vm3679_vm14, %v3474_v7, %v655_v21  ;;  %v758_v13 = vxor.u32 2147483648, %v3684_v35  ;;  %v834_v31 = vadd.s32 %v3616_v54, %v3614_v36 }
 0x137   : > { %v1093_v18 = vand.u32 2139095040, %v3493_v28  ;;  %v851_v14 = vshll.u32 %v3647_v63, %v849_v1  ;;  %v856_v20 = vshll.u32 %v855_v25, 23  ;;  %v943_v48 = vadd.s32 536870912, %v942_v2 }
 0x138   : > { %v1001_v43 = vsub.s32 32, %v1000_v46  ;;  %v852_v16 = vshrl.u32 %v834_v31, %v850_v22  ;;  %v999_v50 = vshrl.u32 %v998_v29, 5  ;;  %v1003_v12 = vshll.u32 %v3360_v40, %v1000_v46 }
 0x139   : > { %v3705_v15 = vshll.u32 %v994_v8, 8  ;;  %v3707_v53 = vshrl.u32 %v943_v48, 30  ;;  %v1006_v57 = vshll.u32 %v3361_v45, %v1000_v46  ;;  %v1009_v54 = vshll.u32 %v3362_v47, %v1000_v46 }
 0x13a   : > { %v1004_v55 = vshrl.u32 %v3361_v45, %v1001_v43  ;;  %v1007_v36 = vshrl.u32 %v3362_v47, %v1001_v43  ;;  %v1010_v63 = vshrl.u32 %v3363_v49, %v1001_v43  ;;  %v1012_v59 = vshll.u32 %v3363_v49, %v1000_v46 }
 0x13b   : > { %v1013_v61 = vshrl.u32 %v3364_v51, %v1001_v43  ;;  %vm676_vm2 = vcmp.lt.s32.totalorder %v3478_v10, 0  ;;  %v857_v56 = vor.u32 4788187, %v856_v20  ;;  %v945_v0 = vshll.u32 %v3707_v53, 30 }
 0x13c   : > { %v1005_v30 = vor.u32 %v1004_v55, %v1003_v12  ;;  %v1008_v60 = vor.u32 %v1007_v36, %v1006_v57  ;;  %v1011_v42 = vor.u32 %v1010_v63, %v1009_v54  ;;  %v1015_v6 = vshll.u32 %v3364_v51, %v1000_v46 }
 0x13d   : > { %v1014_v1 = vor.u32 %v1013_v61, %v1012_v59  ;;  %v1016_v4 = vshrl.u32 %v3365_v58, %v1001_v43  ;;  %v853_v21 = vor.u32 %v852_v16, %v851_v14  ;;  %v3720_v26 = vsub.s32 %v942_v2, %v945_v0 }
 0x13e   : > { %vm1018_vm3 = vcmp.lt.s32.totalorder %v999_v50, 1  ;;  %v1094_v29 = vshrl.u32 %v1093_v18, 23  ;;  %vm3724_vm4 = vcmp.le.f32.partialorder %v674_v11, 0.7853982  ;;  %vm780_vm5 = vcmp.lt.s32.totalorder %v3486_v17, 0 }
 0x13f   : > { %v1002_v25 = vshrl.u32 %v3360_v40, %v1001_v43  ;;  %v1017_v33 = vor.u32 %v1016_v4, %v1015_v6  ;;  %vm1020_vm6 = vcmp.lt.s32.totalorder %v999_v50, 3  ;;  %vm1021_vm7 = vcmp.lt.s32.totalorder %v999_v50, 4 }
 0x140   : > { %v948_v8 = vsub.s32 0, %v3720_v26  ;;  %v1023_v46 = vsel %vm1021_vm7, %v1011_v42, 2102212464  ;;  %v1026_v2 = vsel %vm1018_vm3, %v1005_v30, %v1008_v60  ;;  %v1027_v31 = vsel %vm1021_vm7, %v1014_v1, 920167782 }
 0x141   : > { %v858_v18 = vand.u32 2147483647, %v857_v56  ;;  %vm1019_vm8 = vcmp.lt.s32.totalorder %v999_v50, 2  ;;  %v1028_v11 = vsel %vm1020_vm6, %v1011_v42, %v1027_v31  ;;  %v1030_v14 = vsel %vm1018_vm3, %v1008_v60, %v1011_v42 }
 0x142   : > { %v3145_v20 = vmin.u32 %v948_v8, %v3720_v26  ;;  %v1022_v48 = vsel %vm1018_vm3, %v1002_v25, %v1005_v30  ;;  %v1029_v43 = vsel %vm1019_vm8, %v1026_v2, %v1028_v11  ;;  %v1031_v16 = vsel %vm1021_vm7, %v1017_v33, 1326507024 }
 0x143   : > { %vm3739_vm9 = vcmp.le.f32.partialorder %v778_v37, 0.7853982  ;;  %v1024_v55 = vsel %vm1020_vm6, %v1008_v60, %v1023_v46  ;;  %v1032_v57 = vsel %vm1020_vm6, %v1014_v1, %v1031_v16  ;;  %v860_v63 = vcvt.s32.f32 %v853_v21 }
 0x144   : > { %v3746_v36 = vmul.u32.u64.low %v3705_v15, %v1029_v43  ;;  %v3747_v54 = vmul.u32.u64.high %v3705_v15, %v1029_v43, %v3746_v36  ;;  %v864_v59 = vsub.s32 4, %v3638_v32  ;;  %v950_v61 = vclz %v3145_v20 }
 0x145   : > { %v1033_v56 = vsel %vm1019_vm8, %v1030_v14, %v1032_v57  ;;  %v759_v37 = vsel %vm676_vm2, %v758_v13, %v3684_v35  ;;  %v3152_v60 = vadd.s32 4294967169, %v1094_v29  ;;  %v861_v42 = vmul.f32 %v860_v63, %v858_v18 }
 0x146   : > { %v3756_v0 = vmul.u32.u64.low %v3705_v15, %v1033_v56  ;;  %v3757_v30 = vmul.u32.u64.high %v3705_v15, %v1033_v56, %v3756_v0  ;;  %v3146_v1 = vadd.s32 4294967294, %v950_v61  ;;  %v1025_v6 = vsel %vm1019_vm8, %v1022_v48, %v1024_v55 }
 0x147   : > { %v1090_v4 = vand.u32 2147483647, %v3493_v28  ;;  %v3764_v21 = vsel %vm3679_vm14, 0, %v3691_v23  ;;  %v3771_v35 = vsel %vm676_vm2, %v760_v39, %v3596_v62  ;;  %v1044_v13 = vadd.s32 1, %v3747_v54 }
 0x148   : > { %v1100_v29 = vadd.s32 1, %v3152_v60  ;;  %3318 = vcosq.f32 %v3697_v41  ;;  %v762_v50 = vsel %vm3724_vm4, %v3478_v10, %v759_v37  ;;  %v865_v9 = vsel %vm780_vm5, %v864_v59, %v3638_v32 }
 0x149   : > { %vm3147_vm10 = vcmp.lt.s32.totalorder %v3146_v1, 0  ;;  %v1041_v25 = vmul.u32 %v3705_v15, %v1025_v6  ;;  %vm1043_vm11 = vc.u32 %v3757_v30, %v3746_v36  ;;  %v862_v62 = vxor.u32 2147483648, %v861_v42 }
 0x14a   : > { %v953_v23 = vsel %vm3147_vm10, 0, %v3146_v1  ;;  %vm1101_vm12 = vcmp.gt.s32.totalorder %v1100_v29, 0  ;;  %v1045_v33 = vsel %vm1043_vm11, %v1044_v13, %v3747_v54  ;;  %v1097_v8 = vand.u32 8388607, %v1090_v4 }
 0x14b   : > { %v958_v39 = vsub.s32 4294967266, %v953_v23  ;;  %3320 = vsinq.f32 %v3697_v41  ;;  %v1046_v46 = vadd.s32 %v1045_v33, %v1041_v25  ;;  %v1102_v2 = vsel %vm1101_vm12, %v1100_v29, 0 }
 0x14c   : > { %v1197_v32 = vand.u32 2139095040, %v3502_v38  ;;  %3322 = vcosq.f32 %v762_v50  ;;  %v3791_v15 = vsel %vm3739_vm9, 0, %v865_v9  ;;  %v954_v31 = vsub.s32 32, %v953_v23 }
 0x14d   : > { %v1104_v18 = vand.u32 31, %v1102_v2  ;;  %3324 = vsinq.f32 %v762_v50  ;;  %v938_v11 = vadd.s32 %v3664_v52, %v3670_v34  ;;  %v968_v14 = vsub.s32 4, %v3707_v53 }
 0x14e   : > { %v1047_v20 = vadd.s32 536870912, %v1046_v46  ;;  %v863_v41 = vsel %vm780_vm5, %v862_v62, %v861_v42  ;;  %v959_v48 = vadd.s32 127, %v958_v39  ;;  %v1098_v43 = vor.u32 8388608, %v1097_v8 }
 0x14f   : > { %v1105_v16 = vsub.s32 32, %v1104_v18  ;;  %v955_v55 = vshll.u32 %v3720_v26, %v953_v23  ;;  %v1194_v54 = vand.u32 2147483647, %v3502_v38  ;;  %v1198_v63 = vshrl.u32 %v1197_v32, 23 }
 0x150   : > { %v3799_v57 = vshrl.u32 %v1047_v20, 30  ;;  %v956_v59 = vshrl.u32 %v938_v11, %v954_v31  ;;  %v1103_v61 = vshrl.u32 %v1102_v2, 5  ;;  %v1107_v52 = vshll.u32 %v3360_v40, %v1104_v18 }
 0x151   : > { %v1108_v34 = vshrl.u32 %v3361_v45, %v1105_v16  ;;  %v1110_v37 = vshll.u32 %v3361_v45, %v1104_v18  ;;  %v1111_v0 = vshrl.u32 %v3362_v47, %v1105_v16  ;;  %v1114_v60 = vshrl.u32 %v3363_v49, %v1105_v16 }
 0x152   : > { %v1049_v56 = vshll.u32 %v3799_v57, 30  ;;  %v3808_v26 = vpop.eup %3318  ;;  %v960_v42 = vshll.u32 %v959_v48, 23  ;;  %v1113_v1 = vshll.u32 %v3362_v47, %v1104_v18  ;;  %v1116_v6 = vshll.u32 %v3363_v49, %v1104_v18 }
 0x153   : > { %v1117_v13 = vshrl.u32 %v3364_v51, %v1105_v16  ;;  %v1109_v50 = vor.u32 %v1108_v34, %v1107_v52  ;;  %v1112_v9 = vor.u32 %v1111_v0, %v1110_v37  ;;  %v3156_v23 = vadd.s32 4294967169, %v1198_v63 }
 0x154   : > { %v3813_v29 = vsub.s32 %v1046_v46, %v1049_v56  ;;  %v1115_v25 = vor.u32 %v1114_v60, %v1113_v1  ;;  %v1119_v39 = vshll.u32 %v3364_v51, %v1104_v18  ;;  %v1120_v33 = vshrl.u32 %v3365_v58, %v1105_v16 }
 0x155   : > { %v1118_v62 = vor.u32 %v1117_v13, %v1116_v6  ;;  %v3817_v8 = vpop.eup %3320  ;;  %v866_v2 = vsel %vm3739_vm9, %v3486_v17, %v863_v41  ;;  %v1138_v31 = vshll.u32 %v1098_v43, 8  ;;  %v3825_v46 = vand.u32 8388607, %v1194_v54 }
 0x156   : > { %v1052_v32 = vsub.s32 0, %v3813_v29  ;;  %v3827_v11 = vpop.eup %3322  ;;  %v957_v20 = vor.u32 %v956_v59, %v955_v55  ;;  %v961_v48 = vor.u32 4788187, %v960_v42  ;;  %v1121_v18 = vor.u32 %v1120_v33, %v1119_v39 }
 0x157   : > { %vm1122_vm13 = vcmp.lt.s32.totalorder %v1103_v61, 1  ;;  %v3829_v63 = vpop.eup %3324  ;;  %vm1125_vm14 = vcmp.lt.s32.totalorder %v1103_v61, 4  ;;  %v1204_v41 = vadd.s32 1, %v3156_v23  ;;  %v1106_v43 = vshrl.u32 %v3360_v40, %v1105_v16 }
 0x158   : > { %v3149_v52 = vmin.u32 %v1052_v32, %v3813_v29  ;;  %v1130_v12 = vsel %vm1122_vm13, %v1109_v50, %v1112_v9  ;;  %vm1124_vm15 = vcmp.lt.s32.totalorder %v1103_v61, 3  ;;  %v1127_v34 = vsel %vm1125_vm14, %v1115_v25, 2102212464 }
 0x159   : > { %v1131_v56 = vsel %vm1125_vm14, %v1118_v62, 920167782  ;;  %vm1123_vm0 = vcmp.lt.s32.totalorder %v1103_v61, 2  ;;  %v1134_v55 = vsel %vm1122_vm13, %v1112_v9, %v1115_v25  ;;  %v962_v59 = vand.u32 2147483647, %v961_v48 }
 0x15a   : > { %v1054_v37 = vclz %v3149_v52  ;;  %v1132_v0 = vsel %vm1124_vm15, %v1115_v25, %v1131_v56  ;;  %v964_v60 = vcvt.s32.f32 %v957_v20  ;;  %v1135_v1 = vsel %vm1125_vm14, %v1121_v18, 1326507024 }
 0x15b   : > { %v1133_v42 = vsel %vm1123_vm0, %v1130_v12, %v1132_v0  ;;  %v1126_v13 = vsel %vm1122_vm13, %v1106_v43, %v1109_v50  ;;  %v1128_v39 = vsel %vm1124_vm15, %v1112_v9, %v1127_v34  ;;  %v1136_v23 = vsel %vm1124_vm15, %v1118_v62, %v1135_v1 }
 0x15c   : > { %v3150_v6 = vadd.s32 4294967294, %v1054_v37  ;;  %v1137_v16 = vsel %vm1123_vm0, %v1134_v55, %v1136_v23  ;;  %v3838_v33 = vmul.u32.u64.low %v1138_v31, %v1133_v42  ;;  %v3839_v32 = vmul.u32.u64.high %v1138_v31, %v1133_v42, %v3838_v33 }
 0x15d   : > { %vm1205_vm2 = vcmp.gt.s32.totalorder %v1204_v41, 0  ;;  %v3842_v52 = vmul.u32.u64.low %v1138_v31, %v1137_v16  ;;  %v3843_v25 = vmul.u32.u64.high %v1138_v31, %v1137_v16, %v3842_v52  ;;  %v965_v48 = vmul.f32 %v964_v60, %v962_v59 }
 0x15e   : > { %vm3151_vm3 = vcmp.lt.s32.totalorder %v3150_v6, 0  ;;  %v1206_v20 = vsel %vm1205_vm2, %v1204_v41, 0  ;;  %v1129_v18 = vsel %vm1123_vm0, %v1126_v13, %v1128_v39  ;;  %3326 = vcosq.f32 %v866_v2 }
 0x15f   : > { %v1057_v12 = vsel %vm3151_vm3, 0, %v3150_v6  ;;  %v1208_v56 = vand.u32 31, %v1206_v20  ;;  %v1042_v50 = vadd.s32 %v3746_v36, %v3757_v30  ;;  %3328 = vsinq.f32 %v866_v2 }
 0x160   : > { %v1058_v9 = vsub.s32 32, %v1057_v12  ;;  %v1062_v62 = vsub.s32 4294967266, %v1057_v12  ;;  %v1148_v43 = vadd.s32 1, %v3839_v32  ;;  %v1202_v34 = vor.u32 8388608, %v3825_v46 }
 0x161   : > { %v1209_v37 = vsub.s32 32, %v1208_v56  ;;  %vm884_vm5 = vcmp.lt.s32.totalorder %v3488_v19, 0  ;;  %v1145_v55 = vmul.u32 %v1138_v31, %v1129_v18  ;;  %vm1147_vm6 = vc.u32 %v3843_v25, %v3838_v33 }
 0x162   : > { %v1060_v41 = vshrl.u32 %v1042_v50, %v1058_v9  ;;  %v1063_v0 = vadd.s32 127, %v1062_v62  ;;  %v966_v61 = vxor.u32 2147483648, %v965_v48  ;;  %v1059_v59 = vshll.u32 %v3813_v29, %v1057_v12 }
 0x163   : > { %v1149_v36 = vsel %vm1147_vm6, %v1148_v43, %v3839_v32  ;;  %v1212_v30 = vshrl.u32 %v3361_v45, %v1209_v37  ;;  %vm988_vm7 = vcmp.lt.s32.totalorder %v3491_v27, 0  ;;  %v3857_v60 = vshrl.u32 %v1206_v20, 5 }
 0x164   : > { %v1064_v2 = vshll.u32 %v1063_v0, 23  ;;  %v1150_v46 = vadd.s32 %v1149_v36, %v1145_v55  ;;  %v1215_v42 = vshrl.u32 %v3362_v47, %v1209_v37  ;;  %v1061_v1 = vor.u32 %v1060_v41, %v1059_v59 }
 0x165   : > { %v1211_v31 = vshll.u32 %v3360_v40, %v1208_v56  ;;  %v1214_v6 = vshll.u32 %v3361_v45, %v1208_v56  ;;  %v1218_v13 = vshrl.u32 %v3363_v49, %v1209_v37  ;;  %vm3865_vm8 = vcmp.le.f32.partialorder %v882_v5, 0.7853982 }
 0x166   : > { %v1065_v39 = vor.u32 4788187, %v1064_v2  ;;  %v1151_v23 = vadd.s32 536870912, %v1150_v46  ;;  %v1220_v16 = vshll.u32 %v3363_v49, %v1208_v56  ;;  %v1221_v32 = vshrl.u32 %v3364_v51, %v1209_v37 }
 0x167   : > { %v1213_v52 = vor.u32 %v1212_v30, %v1211_v31  ;;  %v1217_v20 = vshll.u32 %v3362_v47, %v1208_v56  ;;  %v1223_v12 = vshll.u32 %v3364_v51, %v1208_v56  ;;  %v1224_v18 = vshrl.u32 %v3365_v58, %v1209_v37 }
 0x168   : > { %v1066_v50 = vand.u32 2147483647, %v1065_v39  ;;  %v3874_v9 = vshrl.u32 %v1151_v23, 30  ;;  %v1216_v5 = vor.u32 %v1215_v42, %v1214_v6  ;;  %v1222_v62 = vor.u32 %v1221_v32, %v1220_v16  ;;  %v3878_v59 = vpop.eup %3326 }
 0x169   : > { %v1072_v43 = vsub.s32 4, %v3799_v57  ;;  %v1219_v41 = vor.u32 %v1218_v13, %v1217_v20  ;;  %v1225_v0 = vor.u32 %v1224_v18, %v1223_v12  ;;  %v4486_v55 = vand.u32 2147483647, %v3507_v44  ;;  %v3888_v42 = vpop.eup %3328 }
 0x16a   : > { %vm3882_vm9 = vcmp.le.f32.partialorder %v986_v24, 0.7853982  ;;  %v1068_v56 = vcvt.s32.f32 %v1061_v1  ;;  %v1153_v30 = vshll.u32 %v3874_v9, 30  ;;  %vm1229_vm10 = vcmp.lt.s32.totalorder %v3857_v60, 4 }
 0x16b   : > { %v1242_v2 = vshll.u32 %v1202_v34, 8  ;;  %v967_v31 = vsel %vm884_vm5, %v966_v61, %v965_v48  ;;  %vm1226_vm11 = vcmp.lt.s32.totalorder %v3857_v60, 1  ;;  %v1235_v6 = vsel %vm1229_vm10, %v1222_v62, 920167782 }
 0x16c   : > { %v1301_v24 = vand.u32 2139095040, %v3507_v44  ;;  %v1069_v13 = vmul.f32 %v1068_v56, %v1066_v50  ;;  %v3896_v39 = vsub.s32 %v1150_v46, %v1153_v30  ;;  %vm1228_vm12 = vcmp.lt.s32.totalorder %v3857_v60, 3 }
 0x16d   : > { %v1234_v34 = vsel %vm1226_vm11, %v1213_v52, %v1216_v5  ;;  %v1073_v1 = vsel %vm988_vm7, %v1072_v43, %v3799_v57  ;;  %v1236_v48 = vsel %vm1228_vm12, %v1219_v41, %v1235_v6  ;;  %v1238_v61 = vsel %vm1226_vm11, %v1216_v5, %v1219_v41 }
 0x16e   : > { %v1239_v23 = vsel %vm1229_vm10, %v1225_v0, 1326507024  ;;  %v1156_v46 = vsub.s32 0, %v3896_v39  ;;  %v1210_v16 = vshrl.u32 %v3360_v40, %v1209_v37  ;;  %vm1227_vm13 = vcmp.lt.s32.totalorder %v3857_v60, 2 }
 0x16f   : > { %v1231_v32 = vsel %vm1229_vm10, %v1219_v41, 2102212464  ;;  %v970_v57 = vsel %vm3865_vm8, %v3488_v19, %v967_v31  ;;  %v1237_v20 = vsel %vm1227_vm13, %v1234_v34, %v1236_v48  ;;  %v1240_v12 = vsel %vm1228_vm12, %v1222_v62, %v1239_v23 }
 0x170   : > { %v1302_v18 = vshrl.u32 %v1301_v24, 23  ;;  %v1070_v50 = vxor.u32 2147483648, %v1069_v13  ;;  %v3153_v43 = vmin.u32 %v1156_v46, %v3896_v39  ;;  %v1230_v37 = vsel %vm1226_vm11, %v1210_v16, %v1213_v52 }
 0x171   : > { %v1241_v41 = vsel %vm1227_vm13, %v1238_v61, %v1240_v12  ;;  %v1232_v0 = vsel %vm1228_vm12, %v1216_v5, %v1231_v32  ;;  %3330 = vcosq.f32 %v970_v57  ;;  %v3941_v52 = vsel %vm884_vm5, %v968_v14, %v3707_v53 }
 0x172   : > { %v3929_v56 = vmul.u32.u64.low %v1242_v2, %v1241_v41  ;;  %v3930_v30 = vmul.u32.u64.high %v1242_v2, %v1241_v41, %v3929_v56  ;;  %v3160_v31 = vadd.s32 4294967169, %v1302_v18  ;;  %v1158_v6 = vclz %v3153_v43 }
 0x173   : > { %v3932_v62 = vmul.u32.u64.low %v1242_v2, %v1237_v20  ;;  %v3933_v24 = vmul.u32.u64.high %v1242_v2, %v1237_v20, %v3932_v62  ;;  %3332 = vsinq.f32 %v970_v57  ;;  %v3945_v5 = vsel %vm3882_vm9, 0, %v1073_v1 }
 0x174   : > { %v1308_v34 = vadd.s32 1, %v3160_v31  ;;  %v1071_v48 = vsel %vm988_vm7, %v1070_v50, %v1069_v13  ;;  %v1146_v61 = vadd.s32 %v3838_v33, %v3843_v25  ;;  %v3154_v23 = vadd.s32 4294967294, %v1158_v6 }
 0x175   : > { %v1233_v46 = vsel %vm1227_vm13, %v1230_v37, %v1232_v0  ;;  %vm1251_vm14 = vc.u32 %v3930_v30, %v3932_v62  ;;  %v3958_v53 = vand.u32 8388607, %v4486_v55  ;;  %v1252_v14 = vadd.s32 1, %v3933_v24 }
 0x176   : > { %vm1309_vm15 = vcmp.gt.s32.totalorder %v1308_v34, 0  ;;  %vm3155_vm0 = vcmp.lt.s32.totalorder %v3154_v23, 0  ;;  %v3964_v33 = vsel %vm3724_vm4, 0, %v3771_v35  ;;  %v3969_v25 = vsel %vm3882_vm9, %v3491_v27, %v1071_v48 }
 0x177   : > { %v1310_v13 = vsel %vm1309_vm15, %v1308_v34, 0  ;;  %v1161_v60 = vsel %vm3155_vm0, 0, %v3154_v23  ;;  %v1249_v1 = vmul.u32 %v1242_v2, %v1233_v46  ;;  %v1253_v12 = vsel %vm1251_vm14, %v1252_v14, %v3933_v24 }
 0x178   : > { %v1312_v32 = vand.u32 31, %v1310_v13  ;;  %v1162_v57 = vsub.s32 32, %v1161_v60  ;;  %v1166_v20 = vsub.s32 4294967266, %v1161_v60  ;;  %v771_v18 = vxor.u32 2147483648, %v3829_v63 }
 0x179   : > { %v1254_v50 = vadd.s32 %v1253_v12, %v1249_v1  ;;  %v1306_v43 = vor.u32 8388608, %v3958_v53  ;;  %v767_v35 = vadd.s32 3, %v3964_v33  ;;  %v1163_v37 = vshll.u32 %v3896_v39, %v1161_v60 }
 0x17a   : > { %v1313_v22 = vsub.s32 32, %v1312_v32  ;;  %v1164_v36 = vshrl.u32 %v1146_v61, %v1162_v57  ;;  %v1167_v41 = vadd.s32 127, %v1166_v20  ;;  %v1315_v0 = vshll.u32 %v3360_v40, %v1312_v32 }
 0x17b   : > { %v1255_v2 = vadd.s32 536870912, %v1254_v50  ;;  %v1321_v6 = vshll.u32 %v3362_v47, %v1312_v32  ;;  %v3980_v24 = vpop.eup %3330  ;;  %v1311_v53 = vshrl.u32 %v1310_v13, 5  ;;  %v1318_v14 = vshll.u32 %v3361_v45, %v1312_v32 }
 0x17c   : > { %v1316_v56 = vshrl.u32 %v3361_v45, %v1313_v22  ;;  %v1319_v31 = vshrl.u32 %v3362_v47, %v1313_v22  ;;  %v1165_v34 = vor.u32 %v1164_v36, %v1163_v37  ;;  %v1168_v48 = vshll.u32 %v1167_v41, 23 }
 0x17d   : > { %v1322_v23 = vshrl.u32 %v3363_v49, %v1313_v22  ;;  %v1325_v46 = vshrl.u32 %v3364_v51, %v1313_v22  ;;  %v3984_v39 = vpop.eup %3332  ;;  %v3986_v61 = vshrl.u32 %v1255_v2, 30  ;;  %v774_v60 = vxor.u32 2147483648, %v3827_v11 }
 0x17e   : > { %v1169_v1 = vor.u32 4788187, %v1168_v48  ;;  %v1317_v57 = vor.u32 %v1316_v56, %v1315_v0  ;;  %v1324_v20 = vshll.u32 %v3363_v49, %v1312_v32  ;;  %v1320_v37 = vor.u32 %v1319_v31, %v1318_v14 }
 0x17f   : > { %v1323_v47 = vor.u32 %v1322_v23, %v1321_v6  ;;  %v1257_v12 = vshll.u32 %v3986_v61, 30  ;;  %v1327_v36 = vshll.u32 %v3364_v51, %v1312_v32  ;;  %v1328_v41 = vshrl.u32 %v3365_v58, %v1313_v22 }
 0x180   : > { %v1170_v55 = vand.u32 2147483647, %v1169_v1  ;;  %v1172_v2 = vcvt.s32.f32 %v1165_v34  ;;  %v1314_v13 = vshrl.u32 %v3360_v40, %v1313_v22  ;;  %v1326_v16 = vor.u32 %v1325_v46, %v1324_v20 }
 0x181   : > { %vm1092_vm4 = vcmp.lt.s32.totalorder %v3493_v28, 0  ;;  %v3996_v45 = vsub.s32 %v1254_v50, %v1257_v12  ;;  %v1329_v0 = vor.u32 %v1328_v41, %v1327_v36  ;;  %vm1330_vm2 = vcmp.lt.s32.totalorder %v1311_v53, 1 }
 0x182   : > { %vm1333_vm3 = vcmp.lt.s32.totalorder %v1311_v53, 4  ;;  %v1173_v49 = vmul.f32 %v1172_v2, %v1170_v55  ;;  %vm1332_vm5 = vcmp.lt.s32.totalorder %v1311_v53, 3  ;;  %v1334_v56 = vsel %vm1330_vm2, %v1314_v13, %v1317_v57 }
 0x183   : > { %v1335_v31 = vsel %vm1333_vm3, %v1323_v47, 2102212464  ;;  %v1250_v51 = vadd.s32 %v3932_v62, %v3930_v30  ;;  %v1260_v58 = vsub.s32 0, %v3996_v45  ;;  %v1338_v32 = vsel %vm1330_vm2, %v1317_v57, %v1320_v37 }
 0x184   : > { %v1336_v40 = vsel %vm1332_vm5, %v1320_v37, %v1335_v31  ;;  %vm1331_vm6 = vcmp.lt.s32.totalorder %v1311_v53, 2  ;;  %v1339_v50 = vsel %vm1333_vm3, %v1326_v16, 920167782  ;;  %v1342_v22 = vsel %vm1330_vm2, %v1320_v37, %v1323_v47 }
 0x185   : > { %v768_v6 = vand.u32 3, %v767_v35  ;;  %v3157_v34 = vmin.u32 %v1260_v58, %v3996_v45  ;;  %v1337_v55 = vsel %vm1331_vm6, %v1334_v56, %v1336_v40  ;;  %v1340_v48 = vsel %vm1332_vm5, %v1323_v47, %v1339_v50 }
 0x186   : > { %v1343_v23 = vsel %vm1333_vm3, %v1329_v0, 1326507024  ;;  %vm766_vm7 = vweird.f32 %v3478_v10  ;;  %v1174_v30 = vxor.u32 2147483648, %v1173_v49  ;;  %v1341_v62 = vsel %vm1331_vm6, %v1338_v32, %v1340_v48 }
 0x187   : > { %v1344_v46 = vsel %vm1332_vm5, %v1326_v16, %v1343_v23  ;;  %v1346_v14 = vshll.u32 %v1306_v43, 8  ;;  %v1262_v1 = vclz %v3157_v34  ;;  %v1280_v57 = vsub.s32 4, %v3986_v61 }
 0x188   : > { %v1345_v20 = vsel %vm1331_vm6, %v1342_v22, %v1344_v46  ;;  %v971_v35 = vsel %vm3865_vm8, 0, %v3941_v52  ;;  %vm770_vm9 = vcmp.eq.s32.totalorder %v768_v6, 0  ;;  %v4025_v43 = vsel %vm1092_vm4, %v1174_v30, %v1173_v49 }
 0x189   : > { %v4013_v12 = vmul.u32.u64.low %v1346_v14, %v1345_v20  ;;  %v4014_v37 = vmul.u32.u64.high %v1346_v14, %v1345_v20, %v4013_v12  ;;  %v1353_v47 = vmul.u32 %v1346_v14, %v1337_v55  ;;  %v3158_v36 = vadd.s32 4294967294, %v1262_v1 }
 0x18a   : > { %v4016_v41 = vmul.u32.u64.low %v1346_v14, %v1341_v62  ;;  %v4017_v2 = vmul.u32.u64.high %v1346_v14, %v1341_v62, %v4016_v41  ;;  %v772_v16 = vsel %vm770_vm9, %v3827_v11, %v771_v18  ;;  %vm769_vm10 = vcmp.lt.s32.totalorder %v768_v6, 2 }
 0x18b   : > { %vm773_vm8 = vcmp.eq.s32.totalorder %v768_v6, 2  ;;  %v975_v29 = vadd.s32 3, %v971_v35  ;;  %vm3159_vm11 = vcmp.lt.s32.totalorder %v3158_v36, 0  ;;  %vm974_vm12 = vweird.f32 %v3488_v19 }
 0x18c   : > { %v775_v52 = vsel %vm773_vm8, %v774_v60, %v3829_v63  ;;  %v1762_v53 = vand.u32 3, %v3964_v33  ;;  %v1265_v13 = vsel %vm3159_vm11, 0, %v3158_v36  ;;  %vm1355_vm13 = vc.u32 %v4014_v37, %v4016_v41 }
 0x18d   : > { %v776_v0 = vsel %vm769_vm10, %v772_v16, %v775_v52  ;;  %v979_v49 = vxor.u32 2147483648, %v3984_v39  ;;  %v1266_v56 = vsub.s32 32, %v1265_v13  ;;  %v1270_v31 = vsub.s32 4294967266, %v1265_v13 }
 0x18e   : > { %v1356_v58 = vadd.s32 1, %v4017_v2  ;;  %v982_v40 = vxor.u32 2147483648, %v3980_v24  ;;  %vm1196_vm14 = vcmp.lt.s32.totalorder %v3502_v38, 0  ;;  %v1267_v32 = vshll.u32 %v3996_v45, %v1265_v13 }
 0x18f   : > { %v777_v33 = vsel %vm766_vm7, nan, %v776_v0  ;;  %v976_v50 = vand.u32 3, %v975_v29  ;;  %vm1764_vm15 = vcmp.eq.s32.totalorder %v1762_v53, 0  ;;  %vm4043_vm0 = vcmp.le.f32.partialorder %v1090_v4, 0.7853982 }
 0x190   : > { %v1268_v6 = vshrl.u32 %v1250_v51, %v1266_v56  ;;  %v1271_v34 = vadd.s32 127, %v1270_v31  ;;  %v1357_v55 = vsel %vm1355_vm13, %v1356_v58, %v4017_v2  ;;  %v1766_v48 = vsel %vm1764_vm15, %v3827_v11, %v771_v18 }
 0x191   : > { %v1358_v45 = vadd.s32 %v1357_v55, %v1353_v47  ;;  %vm977_vm2 = vcmp.lt.s32.totalorder %v976_v50, 2  ;;  %vm978_vm3 = vcmp.eq.s32.totalorder %v976_v50, 0  ;;  %vm981_vm5 = vcmp.eq.s32.totalorder %v976_v50, 2 }
 0x192   : > { %vm4053_vm6 = vcmp.le.f32.partialorder %v1194_v54, 0.7853982  ;;  %v1269_v4 = vor.u32 %v1268_v6, %v1267_v32  ;;  %v1272_v30 = vshll.u32 %v1271_v34, 23  ;;  %v980_v51 = vsel %vm978_vm3, %v3980_v24, %v979_v49 }
 0x193   : > { %v983_v62 = vsel %vm981_vm5, %v982_v40, %v3984_v39  ;;  %v1359_v46 = vadd.s32 536870912, %v1358_v45  ;;  %vm1767_vm9 = vcmp.eq.s32.totalorder %v1762_v53, 2  ;;  %v1968_v18 = vand.u32 3, %v971_v35 }
 0x194   : > { %v984_v14 = vsel %vm977_vm2, %v980_v51, %v983_v62  ;;  %v1273_v1 = vor.u32 4788187, %v1272_v30  ;;  %vm1763_vm10 = vcmp.lt.s32.totalorder %v1762_v53, 2  ;;  %v1769_v54 = vsel %vm1767_vm9, %v774_v60, %v3829_v63 }
 0x195   : > { %v985_v20 = vsel %vm974_vm12, nan, %v984_v14  ;;  %v1276_v12 = vcvt.s32.f32 %v1269_v4  ;;  %v4064_v47 = vshrl.u32 %v1359_v46, 30  ;;  %v1770_v2 = vsel %vm1763_vm10, %v1766_v48, %v1769_v54 }
 0x196   : > { %v1403_v36 = vpack.c.bf16 %v985_v20, %v777_v33  ;;  %v1274_v16 = vand.u32 2147483647, %v1273_v1  ;;  %v4068_v29 = vsel %vm766_vm7, nan, %v1770_v2  ;;  %vm1970_vm8 = vcmp.eq.s32.totalorder %v1968_v18, 0 }
 0x197   : > { %vm1973_vm11 = vcmp.eq.s32.totalorder %v1968_v18, 2  ;;  %v1361_v35 = vshll.u32 %v4064_v47, 30  ;;  %vm1969_vm13 = vcmp.lt.s32.totalorder %v1968_v18, 2  ;;  %v1972_v52 = vsel %vm1970_vm8, %v3980_v24, %v979_v49 }
 0x198   : > { %1430 = vmatprep.subr.bf16.mxu1 %v1403_v36  ;;  %v1975_v11 = vsel %vm1973_vm11, %v982_v40, %v3984_v39  ;;  %v1277_v63 = vmul.f32 %v1276_v12, %v1274_v16  ;;  %v1281_v60 = vsel %vm1196_vm14, %v1280_v57, %v3986_v61  ;;  %v663_v53 = vadd.s32 3, %v3764_v21 }
 0x199   : > { %v1976_v10 = vsel %vm1969_vm13, %v1972_v52, %v1975_v11  ;;  %v4083_v13 = vsel %vm4043_vm0, %v3493_v28, %v4025_v43  ;;  %v4085_v0 = vsub.s32 %v1358_v45, %v1361_v35  ;;  %v667_v39 = vxor.u32 2147483648, %v3817_v8 }
 0x19a   : > { %v4089_v24 = vsel %vm974_vm12, nan, %v1976_v10  ;;  %3334 = vcosq.f32 %v3969_v25  ;;  %v1278_v61 = vxor.u32 2147483648, %v1277_v63  ;;  %v664_v57 = vand.u32 3, %v663_v53 }
 0x19b   : > { %v670_v49 = vxor.u32 2147483648, %v3808_v26  ;;  %3336 = vsinq.f32 %v3969_v25  ;;  %v4501_v43 = vsub.s32 4, %v3874_v9  ;;  %v4102_v19 = vsel %vm4053_vm6, 0, %v1281_v60 }
 0x19c   : > { %v1364_v31 = vsub.s32 0, %v4085_v0  ;;  %3338 = vsinq.f32 %v4083_v13  ;;  %v1279_v58 = vsel %vm1196_vm14, %v1278_v61, %v1277_v63  ;;  %v1354_v25 = vadd.s32 %v4016_v41, %v4014_v37 }
 0x19d   : > { %v1177_v56 = vsel %vm1092_vm4, %v4501_v43, %v3874_v9  ;;  %vm666_vm7 = vcmp.eq.s32.totalorder %v664_v57, 0  ;;  %v1282_v40 = vsel %vm4053_vm6, %v3502_v38, %v1279_v58  ;;  %vm669_vm4 = vcmp.eq.s32.totalorder %v664_v57, 2 }
 0x19e   : > { %v3161_v9 = vmin.u32 %v1364_v31, %v4085_v0  ;;  %v668_v32 = vsel %vm666_vm7, %v3808_v26, %v667_v39  ;;  %v1384_v33 = vsub.s32 4, %v4064_v47  ;;  %vm665_vm12 = vcmp.lt.s32.totalorder %v664_v57, 2 }
 0x19f   : > { %v671_v50 = vsel %vm669_vm4, %v670_v49, %v3817_v8  ;;  %v871_v6 = vadd.s32 3, %v3791_v15  ;;  %v875_v37 = vxor.u32 2147483648, %v3888_v42  ;;  %v878_v41 = vxor.u32 2147483648, %v3878_v59 }
 0x1a0   : > { %v1366_v34 = vclz %v3161_v9  ;;  %v672_v55 = vsel %vm665_vm12, %v668_v32, %v671_v50  ;;  %3340 = vcosq.f32 %v1282_v40  ;;  %vm662_vm14 = vweird.f32 %v3474_v7 }
 0x1a1   : > { %v872_v48 = vand.u32 3, %v871_v6  ;;  %v1659_v45 = vand.u32 3, %v3764_v21  ;;  %3342 = vsinq.f32 %v1282_v40  ;;  %v673_v4 = vsel %vm662_vm14, nan, %v672_v55 }
 0x1a2   : > { %v3162_v23 = vadd.s32 4294967294, %v1366_v34  ;;  %vm870_vm15 = vweird.f32 %v3486_v17  ;;  %v1865_v30 = vand.u32 3, %v3791_v15  ;;  %v1079_v63 = vadd.s32 3, %v3945_v5 }
 0x1a3   : > { %vm873_vm2 = vcmp.lt.s32.totalorder %v872_v48, 2  ;;  %vm874_vm3 = vcmp.eq.s32.totalorder %v872_v48, 0  ;;  %vm877_vm5 = vcmp.eq.s32.totalorder %v872_v48, 2  ;;  %vm1661_vm9 = vcmp.eq.s32.totalorder %v1659_v45, 0  ;;  %v2477_v48 = vld [vmem:[%s4477_s5] sm:$0xff] }
 0x1a4   : > { %vm3163_vm6 = vcmp.lt.s32.totalorder %v3162_v23, 0  ;;  %v876_v51 = vsel %vm874_vm3, %v3878_v59, %v875_v37  ;;  %v879_v62 = vsel %vm877_vm5, %v878_v41, %v3888_v42  ;;  %v4128_v46 = vpop.eup %3334  ;;  %vm1660_vm10 = vcmp.lt.s32.totalorder %v1659_v45, 2 }
 0x1a5   : > { %v1369_v21 = vsel %vm3163_vm6, 0, %v3162_v23  ;;  %v880_v14 = vsel %vm873_vm2, %v876_v51, %v879_v62  ;;  %v1663_v18 = vsel %vm1661_vm9, %v3808_v26, %v667_v39  ;;  %v4131_v1 = vpop.eup %3336  ;;  %vm1664_vm8 = vcmp.eq.s32.totalorder %v1659_v45, 2  ;;  %v2479_v23 = vld [vmem:[%s4477_s5 + $0x10] sm:$0xff] }
 0x1a6   : > { %v1370_v20 = vsub.s32 32, %v1369_v21  ;;  %v1374_v54 = vsub.s32 4294967266, %v1369_v21  ;;  %v881_v15 = vsel %vm870_vm15, nan, %v880_v14  ;;  %v4135_v12 = vpop.eup %3338  ;;  %v1371_v36 = vshll.u32 %v4085_v0, %v1369_v21 }
 0x1a7   : > { %v1402_v2 = vpack.c.bf16 %v881_v15, %v673_v4  ;;  %v1666_v16 = vsel %vm1664_vm8, %v670_v49, %v3817_v8  ;;  %vm1867_vm11 = vcmp.eq.s32.totalorder %v1865_v30, 0  ;;  %v4143_v60 = vsel %vm4043_vm0, 0, %v1177_v56 }
 0x1a8   : > { %v1372_v35 = vshrl.u32 %v1354_v25, %v1370_v20  ;;  %v1375_v52 = vadd.s32 127, %v1374_v54  ;;  %v1667_v11 = vsel %vm1660_vm10, %v1663_v18, %v1666_v16  ;;  %v1869_v26 = vsel %vm1867_vm11, %v3878_v59, %v875_v37  ;;  %v2478_v54 = vld [vmem:[%s4477_s5 + $0x8] sm:$0xff] }
 0x1a9   : > { %1431 = vmatpush1.bf16.msra.mxu1 %v1402_v2  ;;  %v4147_v10 = vsel %vm662_vm14, nan, %v1667_v11  ;;  %vm1870_vm13 = vcmp.eq.s32.totalorder %v1865_v30, 2  ;;  %vm1866_vm7 = vcmp.lt.s32.totalorder %v1865_v30, 2  ;;  %v1287_v59 = vadd.s32 3, %v4102_v19 }
 0x1aa   : > { %v1373_v53 = vor.u32 %v1372_v35, %v1371_v36  ;;  %v1376_v8 = vshll.u32 %v1375_v52, 23  ;;  %v1872_v0 = vsel %vm1870_vm13, %v878_v41, %v3888_v42  ;;  %v4150_v39 = vpop.eup %3340  ;;  %vm1300_vm4 = vcmp.lt.s32.totalorder %v3507_v44, 0  ;;  %v2480_v35 = vld [vmem:[%s4477_s5 + $0x18] sm:$0xff]  ;;  %v4231_v52 = vld [vmem:[%s3452_s14] sm:$0x77] }
 0x1ab   : > { %v1873_v22 = vsel %vm1866_vm7, %v1869_v26, %v1872_v0  ;;  %v4154_v61 = vpop.eup %3342  ;;  %v1385_v7 = vsel %vm1300_vm4, %v1384_v33, %v4064_v47  ;;  %3344 = vcosq.f32 %v4083_v13  ;;  %v1183_v42 = vadd.s32 3, %v4143_v60 }
 0x1ac   : > { %v1377_v57 = vor.u32 4788187, %v1376_v8  ;;  %v4161_v49 = vsel %vm870_vm15, nan, %v1873_v22  ;;  %v4502_v43 = vand.u32 2147483647, %v3507_v44  ;;  %v1380_v25 = vcvt.s32.f32 %v1373_v53 }
 0x1ad   : > { %v2390_v31 = vpack.c.bf16 %v4161_v49, %v4147_v10  ;;  %v1080_v47 = vand.u32 3, %v1079_v63  ;;  %v1083_v17 = vxor.u32 2147483648, %v4131_v1  ;;  %v1086_v13 = vxor.u32 2147483648, %v4128_v46  ;;  %v3305_v10 = vld [vmem:[%s4474_s2 + $0x8] sm:$0xff]   ;;  %v3051_v49 = vld [vmem:[%s4484_s12] sm:$0xff] }
 0x1ae   : > { %vm4167_vm0 = vcmp.le.f32.partialorder %v4502_v43, 0.7853982  ;;  %v1378_v58 = vand.u32 2147483647, %v1377_v57  ;;  %v1288_v9 = vand.u32 3, %v1287_v59  ;;  %v1291_v32 = vxor.u32 2147483648, %v4154_v61 }
 0x1af   : > { %v1387_v40 = vsel %vm4167_vm0, 0, %v1385_v7  ;;  %vm1082_vm12 = vcmp.eq.s32.totalorder %v1080_v47, 0  ;;  %vm1085_vm14 = vcmp.eq.s32.totalorder %v1080_v47, 2  ;;  %v4179_v50 = vand.u32 3, %v3945_v5  ;;  %v2530_v57 = vld [vmem:[%s4479_s7 + $0x8] sm:$0xff] }
 0x1b0   : > { %v1381_v33 = vmul.f32 %v1380_v25, %v1378_v58  ;;  %v1084_v6 = vsel %vm1082_vm12, %v4128_v46, %v1083_v17  ;;  %v1087_v34 = vsel %vm1085_vm14, %v1086_v13, %v4131_v1  ;;  %v4187_v55 = vand.u32 3, %v1183_v42 }
 0x1b1   : > { %v1391_v41 = vadd.s32 3, %v1387_v40  ;;  %vm1290_vm15 = vcmp.eq.s32.totalorder %v1288_v9, 0  ;;  %vm1081_vm2 = vcmp.lt.s32.totalorder %v1080_v47, 2  ;;  %v1294_v45 = vxor.u32 2147483648, %v4150_v39 }
 0x1b2   : > { %v1382_v37 = vxor.u32 2147483648, %v1381_v33  ;;  %v1292_v5 = vsel %vm1290_vm15, %v4150_v39, %v1291_v32  ;;  %v1187_v30 = vxor.u32 2147483648, %v4135_v12  ;;  %v1088_v51 = vsel %vm1081_vm2, %v1084_v6, %v1087_v34 }
 0x1b3   : > { %vm1293_vm3 = vcmp.eq.s32.totalorder %v1288_v9, 2  ;;  %v3366_v62 = vmov 0   ;;  %vm1289_vm5 = vcmp.lt.s32.totalorder %v1288_v9, 2  ;;  %v2391_v18 = vpack.c.bf16 %v4089_v24, %v4068_v29  ;;  %v2542_v29 = vld [vmem:[%s4479_s7 + $0x68] sm:$0xff]  ;;  %v2843_v24 = vld [vmem:[%s4481_s9] sm:$0xff] }
 0x1b4   : > { %v1383_v4 = vsel %vm1300_vm4, %v1382_v37, %v1381_v33  ;;  %1462 = vmatprep.mubr.bf16.mxu1 %v3366_v62  ;;  %3299 = vset.pattern.permute.xlu0 %v3366_v62  ;;  %v1295_v14 = vsel %vm1293_vm3, %v1294_v45, %v4154_v61  ;;  %vm1078_vm6 = vweird.f32 %v3491_v27  ;;  %vm1286_vm9 = vweird.f32 %v3502_v38  ;;  %v2534_v37 = vld [vmem:[%s4479_s7 + $0x28] sm:$0xff] }
 0x1b5   : > { %v1386_v21 = vsel %vm4167_vm0, %v3507_v44, %v1383_v4  ;;  %2483 = vperm.xlu0 %3299, %v2477_v48   ;;  %3300 = vset.pattern.permute.xlu1 %v3366_v62  ;;  %v1296_v20 = vsel %vm1289_vm5, %v1292_v5, %v1295_v14  ;;  %v3345_v15 = vpop.eup %3344  ;;  %v4217_v36 = vand.u32 3, %v1391_v41  ;;  %v4221_v2 = vsel %vm1078_vm6, nan, %v1088_v51  ;;  %v2535_v14 = vld [vmem:[%s4479_s7 + $0x30] sm:$0xff] }
 0x1b6   : > { %3346 = vcosq.f32 %v1386_v21  ;;  %2493 = vperm.xlu1 %3300, %v2479_v23   ;;  %2722 = vmatprep.mubr.bf16.mxu0 %v3366_v62  ;;  %v4225_v16 = vsel %vm1286_vm9, nan, %v1296_v20  ;;  %v564_v11 = vpack.c.bf16 %v4231_v52, %v4231_v52  ;;  %v2277_v26 = vand.u32 3, %v4102_v19  ;;  %v2529_v19 = vld [vmem:[%s4479_s7] sm:$0xff]  ;;  %v2540_v52 = vld [vmem:[%s4479_s7 + $0x58] sm:$0xff] }
 0x1b7   : > { %3348 = vsinq.f32 %v1386_v21  ;;  %v1404_v63 = vpack.c.bf16 %v4225_v16, %v4221_v2  ;;  %v565_v53 = vpack.c.bf16 %v3458_v3, %v3458_v3  ;;  %v2174_v8 = vand.u32 3, %v4143_v60  ;;  %v2537_v3 = vld [vmem:[%s4479_s7 + $0x40] sm:$0xff]  ;;  %v2538_v16 = vld [vmem:[%s4479_s7 + $0x48] sm:$0xff] }
 0x1b8   : > { %v4241_v0 = vand.u32 3, %v1387_v40  ;;  %vm1186_vm10 = vcmp.eq.s32.totalorder %v4187_v55, 0  ;;  %vm1185_vm8 = vcmp.lt.s32.totalorder %v4187_v55, 2  ;;  %v1190_v22 = vxor.u32 2147483648, %v3345_v15 }
 0x1b9   : > { %2488 = vperm.xlu0 %3299, %v2478_v54   ;;  %v1188_v59 = vsel %vm1186_vm10, %v3345_v15, %v1187_v30  ;;  %vm2073_vm11 = vcmp.eq.s32.totalorder %v4179_v50, 0  ;;  %vm1189_vm13 = vcmp.eq.s32.totalorder %v4187_v55, 2  ;;  %vm1394_vm7 = vcmp.eq.s32.totalorder %v4217_v36, 0 }
 0x1ba   : > { %2498 = vperm.xlu1 %3300, %v2480_v35   ;;  %v2075_v60 = vsel %vm2073_vm11, %v4128_v46, %v1083_v17  ;;  %vm2076_vm4 = vcmp.eq.s32.totalorder %v4179_v50, 2  ;;  %vm1393_vm0 = vcmp.lt.s32.totalorder %v4217_v36, 2  ;;  %vm2072_vm12 = vcmp.lt.s32.totalorder %v4179_v50, 2  ;;  %v2531_v46 = vld [vmem:[%s4479_s7 + $0x10] sm:$0xff] }
 0x1bb   : > { %v2078_v7 = vsel %vm2076_vm4, %v1086_v13, %v4131_v1  ;;  %vm2279_vm14 = vcmp.eq.s32.totalorder %v2277_v26, 0  ;;  %vm2282_vm15 = vcmp.eq.s32.totalorder %v2277_v26, 2  ;;  %vm2278_vm2 = vcmp.lt.s32.totalorder %v2277_v26, 2  ;;  %v2539_v35 = vld [vmem:[%s4479_s7 + $0x50] sm:$0xff]  ;;  %v2541_v26 = vld [vmem:[%s4479_s7 + $0x60] sm:$0xff] }
 0x1bc   : > { %v2079_v42 = vsel %vm2072_vm12, %v2075_v60, %v2078_v7  ;;  %v2281_v43 = vsel %vm2279_vm14, %v4150_v39, %v1291_v32  ;;  %v2284_v56 = vsel %vm2282_vm15, %v1294_v45, %v4154_v61  ;;  %v1191_v58 = vsel %vm1189_vm13, %v1190_v22, %v4135_v12  ;;  %v2532_v61 = vld [vmem:[%s4479_s7 + $0x18] sm:$0xff] }
 0x1bd   : > { %2547 = vperm.xlu0 %3299, %v2529_v19   ;;  %vm1499_vm3 = vcmask 1040384   ;;  %v2285_v25 = vsel %vm2278_vm2, %v2281_v43, %v2284_v56  ;;  %vm2176_vm5 = vcmp.eq.s32.totalorder %v2174_v8, 0  ;;  %vm2179_vm10 = vcmp.eq.s32.totalorder %v2174_v8, 2  ;;  %v3307_v19 = vld [vmem:[%s4476_s4 + $0x8] sm:$0xff]  }
 0x1be   : > { %2552 = vperm.xlu1 %3300, %v2530_v57   ;;  %v4275_v1 = vsel %vm1078_vm6, nan, %v2079_v42  ;;  %v4279_v39 = vsel %vm1286_vm9, nan, %v2285_v25  ;;  %vm1397_vm11 = vcmp.eq.s32.totalorder %v4217_v36, 2  ;;  %v2178_v17 = vsel %vm2176_vm5, %v3345_v15, %v1187_v30  ;;  %v2536_v15 = vld [vmem:[%s4479_s7 + $0x38] sm:$0xff]  ;;  %v3302_v36 = vld [vmem:[%s4475_s3] sm:$0xff]  }
 0x1bf   : > { %v2181_v40 = vsel %vm2179_vm10, %v1190_v22, %v4135_v12  ;;  %v2392_v27 = vpack.c.bf16 %v4279_v39, %v4275_v1  ;;  %v1192_v38 = vsel %vm1185_vm8, %v1188_v59, %v1191_v58  ;;  %vm1500_vm6 = vcmask 1041408   ;;  %v2533_v12 = vld [vmem:[%s4479_s7 + $0x20] sm:$0xff]  ;;  %v2846_v59 = vld [vmem:[%s4481_s9 + $0x18] sm:$0xff] }
 0x1c0   : > { %v3347_v47 = vpop.eup %3346  ;;  %v3367_v32 = vmov 65535   ;;  %vm1423_vm9 = vcmask 1046528   ;;  %vm2175_vm13 = vcmp.lt.s32.totalorder %v2174_v8, 2  ;;  %vm2385_vm4 = vcmp.eq.s32.totalorder %v4241_v0, 2  ;;  %v2544_v8 = vld [vmem:[%s4479_s7 + $0x78] sm:$0xff] }
 0x1c1   : > { %v3349_v13 = vpop.eup %3348  ;;  %v1398_v9 = vxor.u32 2147483648, %v3347_v47  ;;  %v1501_v33 = vsel %vm1499_vm3, 4294967295, %v3367_v32  ;;  %2557 = vperm.xlu0 %3299, %v2531_v46   ;;  %v2182_v34 = vsel %vm2175_vm13, %v2178_v17, %v2181_v40  ;;  %vm2382_vm8 = vcmp.eq.s32.totalorder %v4241_v0, 0 }
 0x1c2   : > { %v1395_v50 = vxor.u32 2147483648, %v3349_v13  ;;  %2562 = vperm.xlu1 %3300, %v2532_v61   ;;  %v1502_v48 = vsel %vm1500_vm6, %v1501_v33, 0  ;;  %vm2381_vm12 = vcmp.lt.s32.totalorder %v4241_v0, 2  ;;  %vm1182_vm14 = vweird.f32 %v3493_v28  ;;  %v2845_v0 = vld [vmem:[%s4481_s9 + $0x10] sm:$0xff] }
 0x1c3   : > { %v1399_v6 = vsel %vm1397_vm11, %v1398_v9, %v3349_v13  ;;  %v2387_v55 = vsel %vm2385_vm4, %v1398_v9, %v3349_v13  ;;  %vm1390_vm15 = vweird.f32 %v3507_v44  ;;  %v1193_v4 = vsel %vm1182_vm14, nan, %v1192_v38 }
 0x1c4   : > { %v1396_v41 = vsel %vm1394_vm7, %v3347_v47, %v1395_v50  ;;  %v2384_v5 = vsel %vm2382_vm8, %v3347_v47, %v1395_v50  ;;  %v2183_v51 = vsel %vm1182_vm14, nan, %v2182_v34  ;;  %v1425_v28 = vsel %vm1423_vm9, %v1404_v63, 0  ;;  %v3304_v63 = vld [vmem:[%s4474_s2] sm:$0xff]  }
 0x1c5   : > { %v1400_v45 = vsel %vm1393_vm0, %v1396_v41, %v1399_v6  ;;  %v2388_v23 = vsel %vm2381_vm12, %v2384_v5, %v2387_v55  ;;  %2567 = vperm.xlu0 %3299, %v2533_v12   ;;  %v1507_v44 = vand.u32 %v1502_v48, %v565_v53  ;;  %vm1416_vm7 = vcmask 244736   ;;  %v2543_v53 = vld [vmem:[%s4479_s7 + $0x70] sm:$0xff]  ;;  %v3308_v34 = vld [vmem:[%s4478_s6] sm:$0xff]   ;;  %v3309_v55 = vld [vmem:[%s4478_s6 + $0x8] sm:$0xff]  }
 0x1c6   : > { %v1401_v30 = vsel %vm1390_vm15, nan, %v1400_v45  ;;  %v2389_v21 = vsel %vm1390_vm15, nan, %v2388_v23  ;;  %2572 = vperm.xlu1 %3300, %v2534_v37   ;;  %v1504_v2 = vand.u32 %v1502_v48, %v564_v11  ;;  %v3303_v11 = vld [vmem:[%s4475_s3 + $0x8] sm:$0xff]   ;;  %v2411_v22 = vsel %vm1423_vm9, %v2392_v27, 0  ;;  %v3310_v37 = vld [vmem:[%s4478_s6 + $0x10] sm:$0xff]   ;;  %v3311_v41 = vld [vmem:[%s4478_s6 + $0x18] sm:$0xff]  }
 0x1c7   : > { %v1405_v20 = vpack.c.bf16 %v1401_v30, %v1193_v4  ;;  %v2393_v54 = vpack.c.bf16 %v2389_v21, %v2183_v51  ;;  %v3312_v48 = vld [vmem:[%s4478_s6 + $0x20] sm:$0xff]   ;;  %v3313_v5 = vld [vmem:[%s4478_s6 + $0x28] sm:$0xff]   ;;  %v3314_v45 = vld [vmem:[%s4478_s6 + $0x30] sm:$0xff]   ;;  %vm2962_vm0 = vcmask 785408  }
 0x1c8   : > { %v3315_v23 = vld [vmem:[%s4478_s6 + $0x38] sm:$0xff]  }
 0x1c9   : > { %3166 = vmatprep.subr.msk.bf16.mxu1 %vm1423_vm9, %v1405_v20  ;;  %2577 = vperm.xlu0 %3299, %v2535_v14  }
 0x1ca   : > { %1433 = vmatpush1.bf16.msra.mxu1 %v1425_v28  ;;  %2582 = vperm.xlu1 %3300, %v2536_v15  }
 0x1cb   : > { %1509 = vmatprep.subr.bf16.mxu1 %v1507_v44 }
 0x1cd   : > { %3167 = vmatmul.mubr.msk.bf16.vlgmr.msra.gmra.mrb[0].mxu1 %vm1416_vm7, %v3302_v36  ;;  %2587 = vperm.xlu0 %3299, %v2537_v3  }
 0x1ce   : > { %1510 = vmatpush1.bf16.msra.mxu1 %v1504_v2  ;;  %1472 = vmatprep.mubr.bf16.mxu1 %v3366_v62 }
 0x1cf   : > { %2416 = vmatprep.subr.bf16.mxu1 %v2391_v18  ;;  %2592 = vperm.xlu1 %3300, %v2538_v16   ;;  %v2844_v18 = vld [vmem:[%s4481_s9 + $0x8] sm:$0xff] }
 0x1d1   : > { %2597 = vperm.xlu0 %3299, %v2539_v35  }
 0x1d3   : > { %2602 = vperm.xlu1 %3300, %v2540_v52  }
 0x1d5   : > { %3168 = vmatmul.mubr.msk.bf16.gmra.mrb[4].mxu1 %vm1416_vm7, %v3303_v11  ;;  %2607 = vperm.xlu0 %3299, %v2541_v26  }
 0x1d6   : > { %1541 = vmatprep.mubr.bf16.mxu1 %v3366_v62 }
 0x1d7   : > { %2612 = vperm.xlu1 %3300, %v2542_v29  }
 0x1d9   : > { %2849 = vperm.xlu0 %3299, %v2843_v24  }
 0x1db   : > { %2854 = vperm.xlu1 %3300, %v2844_v18  }
 0x1dd   : > { %3171 = vmatmul.mubr.msk.bf16.vlgmr.msra.gmra.mrb[0].mxu1 %vm452_vm1, %v3304_v63  ;;  %2617 = vperm.xlu0 %3299, %v2543_v53  }
 0x1de   : > { %2417 = vmatpush1.bf16.msra.mxu1 %v2390_v31  ;;  %1551 = vmatprep.mubr.bf16.mxu1 %v3366_v62  ;;  %v3306_v31 = vld [vmem:[%s4476_s4] sm:$0xff]  }
 0x1df   : > { %3207 = vmatprep.subr.msk.bf16.mxu1 %vm1423_vm9, %v2393_v54  ;;  %2622 = vperm.xlu1 %3300, %v2544_v8  }
 0x1e1   : > { %2859 = vperm.xlu0 %3299, %v2845_v0  }
 0x1e2   : > { %2419 = vmatpush1.bf16.msra.mxu1 %v2411_v22 }
 0x1e3   : > { %2864 = vperm.xlu1 %3300, %v2846_v59  }
 0x1e5   : > { %3172 = vmatmul.mubr.msk.bf16.gmra.mrb[4].mxu1 %vm452_vm1, %v3305_v10  ;;  %3054 = vperm.xlu0 %3299, %v3051_v49   ;;  %vm2665_vm1 = vcmask 261120  }
 0x1e6   : > { %2448 = vmatprep.mubr.bf16.mxu1 %v3366_v62 }
 0x1ed   : > { %3208 = vmatmul.mubr.msk.bf16.vlgmr.msra.gmra.mrb[0].mxu1 %vm1416_vm7, %v3306_v31 }
 0x1ee   : > { %2458 = vmatprep.mubr.bf16.mxu1 %v3366_v62 }
 0x1f5   : > { %3209 = vmatmul.mubr.msk.bf16.gmra.mrb[4].mxu1 %vm1416_vm7, %v3307_v19 }
 0x1f6   : > { %2915 = vmatprep.mubr.bf16.mxu1 %v3366_v62 }
 0x234   : > { %v2484_v60 = vpop.permute.xlu0 %2483 }
 0x235   : > { %v2494_v46 = vpop.permute.xlu1 %2493 }
 0x238   : > { %v2489_v42 = vpop.permute.xlu0 %2488 }
 0x239   : > { %v2499_v27 = vpop.permute.xlu1 %2498 }
 0x23c   : > { %v2548_v4 = vpop.permute.xlu0 %2547 }
 0x23d   : > { %v2553_v14 = vpop.permute.xlu1 %2552 }
 0x240   : > { %v2558_v52 = vpop.permute.xlu0 %2557 }
 0x241   : > { %v2563_v18 = vpop.permute.xlu1 %2562 }
 0x2c0   : > { %v2450_v57 = vpop.f32.mrb[0].mxu1 }
 0x2c1   : > { %v2452_v7 = vpop.f32.mrb[1].mxu1  ;;  %v2501_v56 = vadd.f32 %v2484_v60, %v2450_v57 }
 0x2c2   : > { %v2454_v43 = vpop.f32.mrb[2].mxu1  ;;  %v2502_v1 = vadd.f32 %v2484_v60, %v2452_v7  ;;  %v2568_v60 = vpop.permute.xlu0 %2567 }
 0x2c3   : > { %v2503_v58 = vadd.f32 %v2489_v42, %v2454_v43  ;;  %v2456_v25 = vpop.f32.mrb[3].mxu1 }
 0x2c4   : > { %v2504_v39 = vadd.f32 %v2489_v42, %v2456_v25 }
 0x2c5   : > { %v2525_v61 = vpack.c.bf16 %v2503_v58, %v2501_v56  ;;  %v2573_v56 = vpop.permute.xlu1 %2572 }
 0x2c6   : > { %v2526_v47 = vpack.c.bf16 %v2504_v39, %v2502_v1 }
 0x2c8   : > { %v2460_v17 = vpop.f32.mrb[4].mxu1  ;;  %2690 = vmatprep.subr.bf16.mxu0 %v2526_v47 }
 0x2c9   : > { %v2462_v40 = vpop.f32.mrb[5].mxu1  ;;  %2691 = vmatpush1.bf16.msra.mxu0 %v2525_v61  ;;  %v2505_v38 = vadd.f32 %v2494_v46, %v2460_v17 }
 0x2ca   : > { %v2464_v13 = vpop.f32.mrb[6].mxu1  ;;  %v2506_v33 = vadd.f32 %v2494_v46, %v2462_v40  ;;  %v3316_v46 = vld [vmem:[%s4480_s8] sm:$0xff]  }
 0x2cb   : > { %v2507_v9 = vadd.f32 %v2499_v27, %v2464_v13  ;;  %v2466_v32 = vpop.f32.mrb[7].mxu1 }
 0x2cc   : > { %v2508_v50 = vadd.f32 %v2499_v27, %v2466_v32 }
 0x2cd   : > { %v2527_v12 = vpack.c.bf16 %v2507_v9, %v2505_v38  ;;  %v2578_v38 = vpop.permute.xlu0 %2577 }
 0x2ce   : > { %v2528_v6 = vpack.c.bf16 %v2508_v50, %v2506_v33 }
 0x2d0   : > { %2692 = vmatprep.subr.bf16.mxu0 %v2528_v6 }
 0x2d1   : > { %2693 = vmatpush1.bf16.msra.mxu0 %v2527_v12  ;;  %v2583_v12 = vpop.permute.xlu1 %2582 }
 0x2d4   : > { %3218 = vmatmul.mubr.msk.bf16.vlgmr.msra.gmra.mrb[8].mxu0 %vm2665_vm1, %v3308_v34 }
 0x2d5   : > { %2732 = vmatprep.mubr.bf16.mxu0 %v3366_v62 }
 0x2dc   : > { %3219 = vmatmul.mubr.msk.bf16.gmra.mrb[12].mxu0 %vm2665_vm1, %v3309_v55  ;;  %v3317_v55 = vld [vmem:[%s4480_s8 + $0x8] sm:$0xff]  }
 0x2dd   : > { %2742 = vmatprep.mubr.bf16.mxu0 %v3366_v62 }
 0x2e4   : > { %3220 = vmatmul.mubr.msk.bf16.gmra.mrb[16].mxu0 %vm2665_vm1, %v3310_v37 }
 0x2e5   : > { %2752 = vmatprep.mubr.bf16.mxu0 %v3366_v62 }
 0x2ec   : > { %3221 = vmatmul.mubr.msk.bf16.gmra.mrb[20].mxu0 %vm2665_vm1, %v3311_v41 }
 0x2ed   : > { %2762 = vmatprep.mubr.bf16.mxu0 %v3366_v62 }
 0x2f4   : > { %3222 = vmatmul.mubr.msk.bf16.gmra.mrb[24].mxu0 %vm2665_vm1, %v3312_v48 }
 0x2f5   : > { %2772 = vmatprep.mubr.bf16.mxu0 %v3366_v62 }
 0x2fc   : > { %3223 = vmatmul.mubr.msk.bf16.gmra.mrb[28].mxu0 %vm2665_vm1, %v3313_v5 }
 0x2fd   : > { %2782 = vmatprep.mubr.bf16.mxu0 %v3366_v62 }
 0x304   : > { %3224 = vmatmul.mubr.msk.bf16.gmra.mrb[32].mxu0 %vm2665_vm1, %v3314_v45 }
 0x305   : > { %2792 = vmatprep.mubr.bf16.mxu0 %v3366_v62 }
 0x30c   : > { %3225 = vmatmul.mubr.msk.bf16.gmra.mrb[36].mxu0 %vm2665_vm1, %v3315_v23 }
 0x30d   : > { %3042 = vmatprep.mubr.bf16.mxu0 %v3366_v62 }
 0x3a7   : > { %v2724_v30 = vpop.f32.mrb[8].mxu0 }
 0x3a8   : > { %v2725_v51 = vadd.f32 %v2724_v30, %v2548_v4  ;;  %v2726_v21 = vpop.f32.mrb[9].mxu0 }
 0x3a9   : > { %v2727_v20 = vadd.f32 %v2726_v21, %v2548_v4  ;;  %v2728_v28 = vpop.f32.mrb[10].mxu0 }
 0x3aa   : > { %v2729_v44 = vadd.f32 %v2728_v28, %v2553_v14  ;;  %v2730_v54 = vpop.f32.mrb[11].mxu0  ;;  %v2803_v36 = vmax.f32 %v2725_v51, 0.0  ;;  %v2588_v51 = vpop.permute.xlu0 %2587 }
 0x3ab   : > { %v2731_v15 = vadd.f32 %v2730_v54, %v2553_v14  ;;  %v2804_v3 = vmax.f32 %v2727_v20, 0.0 }
 0x3ac   : > { %v2805_v2 = vmax.f32 %v2729_v44, 0.0  ;;  %v2593_v44 = vpop.permute.xlu1 %2592 }
 0x3ad   : > { %v2806_v16 = vmax.f32 %v2731_v15, 0.0 }
 0x3ae   : > { %v2839_v35 = vpack.c.bf16 %v2805_v2, %v2803_v36 }
 0x3af   : > { %v2840_v11 = vpack.c.bf16 %v2806_v16, %v2804_v3  ;;  %v2734_v26 = vpop.f32.mrb[12].mxu0 }
 0x3b0   : > { %v2735_v29 = vadd.f32 %v2734_v26, %v2558_v52  ;;  %v2736_v24 = vpop.f32.mrb[13].mxu0 }
 0x3b1   : > { %v2737_v63 = vadd.f32 %v2736_v24, %v2558_v52  ;;  %v2738_v53 = vpop.f32.mrb[14].mxu0  ;;  %2883 = vmatprep.subr.bf16.mxu1 %v2840_v11  ;;  %v2598_v52 = vpop.permute.xlu0 %2597 }
 0x3b2   : > { %v2739_v8 = vadd.f32 %v2738_v53, %v2563_v18  ;;  %v2740_v0 = vpop.f32.mrb[15].mxu0  ;;  %2884 = vmatpush1.bf16.msra.mxu1 %v2839_v35  ;;  %v2807_v22 = vmax.f32 %v2735_v29, 0.0 }
 0x3b3   : > { %v2741_v59 = vadd.f32 %v2740_v0, %v2563_v18  ;;  %v2808_v49 = vmax.f32 %v2737_v63, 0.0 }
 0x3b4   : > { %v2809_v10 = vmax.f32 %v2739_v8, 0.0 }
 0x3b5   : > { %v2810_v31 = vmax.f32 %v2741_v59, 0.0 }
 0x3b6   : > { %v2841_v19 = vpack.c.bf16 %v2809_v10, %v2807_v22  ;;  %v2608_v10 = vpop.permute.xlu0 %2607 }
 0x3b7   : > { %v2842_v57 = vpack.c.bf16 %v2810_v31, %v2808_v49  ;;  %v2744_v7 = vpop.f32.mrb[16].mxu0 }
 0x3b8   : > { %v2745_v42 = vadd.f32 %v2744_v7, %v2568_v60  ;;  %v2746_v43 = vpop.f32.mrb[17].mxu0 }
 0x3b9   : > { %v2747_v58 = vadd.f32 %v2746_v43, %v2568_v60  ;;  %v2748_v25 = vpop.f32.mrb[18].mxu0  ;;  %2885 = vmatprep.subr.bf16.mxu1 %v2842_v57 }
 0x3ba   : > { %v2749_v1 = vadd.f32 %v2748_v25, %v2573_v56  ;;  %v2750_v39 = vpop.f32.mrb[19].mxu0  ;;  %2886 = vmatpush1.bf16.msra.mxu1 %v2841_v19  ;;  %v2811_v47 = vmax.f32 %v2745_v42, 0.0 }
 0x3bb   : > { %v2751_v61 = vadd.f32 %v2750_v39, %v2573_v56  ;;  %v2812_v40 = vmax.f32 %v2747_v58, 0.0 }
 0x3bc   : > { %v2813_v17 = vmax.f32 %v2749_v1, 0.0 }
 0x3bd   : > { %v2814_v27 = vmax.f32 %v2751_v61, 0.0  ;;  %3228 = vmatmul.mubr.msk.bf16.vlgmr.msra.gmra.mrb[8].mxu1 %vm2665_vm1, %v3316_v46  ;;  %v2850_v46 = vpop.permute.xlu0 %2849 }
 0x3be   : > { %v2950_v13 = vpack.c.bf16 %v2813_v17, %v2811_v47  ;;  %2925 = vmatprep.mubr.bf16.mxu1 %v3366_v62 }
 0x3bf   : > { %v2951_v9 = vpack.c.bf16 %v2814_v27, %v2812_v40  ;;  %v2754_v32 = vpop.f32.mrb[20].mxu0 }
 0x3c0   : > { %v2755_v33 = vadd.f32 %v2754_v32, %v2578_v38  ;;  %v2756_v50 = vpop.f32.mrb[21].mxu0 }
 0x3c1   : > { %v2757_v6 = vadd.f32 %v2756_v50, %v2578_v38  ;;  %v2758_v34 = vpop.f32.mrb[22].mxu0  ;;  %2966 = vmatprep.subr.bf16.mxu1 %v2951_v9 }
 0x3c2   : > { %v2759_v37 = vadd.f32 %v2758_v34, %v2583_v12  ;;  %v2760_v41 = vpop.f32.mrb[23].mxu0  ;;  %2967 = vmatpush1.bf16.msra.mxu1 %v2950_v13  ;;  %v2815_v5 = vmax.f32 %v2755_v33, 0.0  ;;  %v2618_v33 = vpop.permute.xlu0 %2617 }
 0x3c3   : > { %v2761_v48 = vadd.f32 %v2760_v41, %v2583_v12  ;;  %v2816_v23 = vmax.f32 %v2757_v6, 0.0 }
 0x3c4   : > { %v2817_v45 = vmax.f32 %v2759_v37, 0.0 }
 0x3c5   : > { %v2818_v4 = vmax.f32 %v2761_v48, 0.0  ;;  %3229 = vmatmul.mubr.msk.bf16.gmra.mrb[12].mxu1 %vm2665_vm1, %v3317_v55 }
 0x3c6   : > { %v2952_v30 = vpack.c.bf16 %v2817_v45, %v2815_v5  ;;  %2998 = vmatprep.mubr.bf16.mxu1 %v3366_v62  ;;  %v2603_v62 = vpop.permute.xlu1 %2602 }
 0x3c7   : > { %v2953_v21 = vpack.c.bf16 %v2818_v4, %v2816_v23  ;;  %v2764_v14 = vpop.f32.mrb[24].mxu0 }
 0x3c8   : > { %v2765_v20 = vadd.f32 %v2764_v14, %v2588_v51  ;;  %v2766_v28 = vpop.f32.mrb[25].mxu0 }
 0x3c9   : > { %v2767_v54 = vadd.f32 %v2766_v28, %v2588_v51  ;;  %v2768_v15 = vpop.f32.mrb[26].mxu0  ;;  %2968 = vmatprep.subr.bf16.mxu1 %v2953_v21 }
 0x3ca   : > { %v2769_v36 = vadd.f32 %v2768_v15, %v2593_v44  ;;  %v2770_v2 = vpop.f32.mrb[27].mxu0  ;;  %2969 = vmatpush1.bf16.msra.mxu1 %v2952_v30  ;;  %v2819_v16 = vmax.f32 %v2765_v20, 0.0  ;;  %v2613_v60 = vpop.permute.xlu1 %2612  ;;  %v2949_v20 = vld [vmem:[%s4483_s11] sm:$0xf] }
 0x3cb   : > { %v2771_v3 = vadd.f32 %v2770_v2, %v2593_v44  ;;  %v2820_v11 = vmax.f32 %v2767_v54, 0.0 }
 0x3cc   : > { %v2821_v35 = vmax.f32 %v2769_v36, 0.0 }
 0x3cd   : > { %v2822_v26 = vmax.f32 %v2771_v3, 0.0 }
 0x3ce   : > { %v2954_v29 = vpack.c.bf16 %v2821_v35, %v2819_v16  ;;  %v2855_v17 = vpop.permute.xlu1 %2854 }
 0x3cf   : > { %v2955_v24 = vpack.c.bf16 %v2822_v26, %v2820_v11  ;;  %v2774_v18 = vpop.f32.mrb[28].mxu0 }
 0x3d0   : > { %v2775_v63 = vadd.f32 %v2774_v18, %v2598_v52  ;;  %v2776_v53 = vpop.f32.mrb[29].mxu0 }
 0x3d1   : > { %v2777_v8 = vadd.f32 %v2776_v53, %v2598_v52  ;;  %v2778_v0 = vpop.f32.mrb[30].mxu0  ;;  %2970 = vmatprep.subr.bf16.mxu1 %v2955_v24 }
 0x3d2   : > { %v2779_v59 = vadd.f32 %v2778_v0, %v2603_v62  ;;  %v2780_v22 = vpop.f32.mrb[31].mxu0  ;;  %2971 = vmatpush1.bf16.msra.mxu1 %v2954_v29  ;;  %v2823_v31 = vmax.f32 %v2775_v63, 0.0  ;;  %v2623_v55 = vpop.permute.xlu1 %2622 }
 0x3d3   : > { %v2781_v49 = vadd.f32 %v2780_v22, %v2603_v62  ;;  %v2824_v57 = vmax.f32 %v2777_v8, 0.0  ;;  %v2860_v62 = vpop.permute.xlu0 %2859 }
 0x3d4   : > { %v2825_v19 = vmax.f32 %v2779_v59, 0.0 }
 0x3d5   : > { %v2826_v7 = vmax.f32 %v2781_v49, 0.0 }
 0x3d6   : > { %v2956_v42 = vpack.c.bf16 %v2825_v19, %v2823_v31  ;;  %v2865_v8 = vpop.permute.xlu1 %2864 }
 0x3d7   : > { %v2957_v43 = vpack.c.bf16 %v2826_v7, %v2824_v57  ;;  %v2784_v56 = vpop.f32.mrb[32].mxu0 }
 0x3d8   : > { %v2785_v58 = vadd.f32 %v2784_v56, %v2608_v10  ;;  %v2786_v25 = vpop.f32.mrb[33].mxu0 }
 0x3d9   : > { %v2787_v1 = vadd.f32 %v2786_v25, %v2608_v10  ;;  %v2788_v39 = vpop.f32.mrb[34].mxu0  ;;  %2972 = vmatprep.subr.bf16.mxu1 %v2957_v43  ;;  %v2944_v43 = vld [vmem:[%s4482_s10] sm:$0xf] }
 0x3da   : > { %v2789_v61 = vadd.f32 %v2788_v39, %v2613_v60  ;;  %v2790_v47 = vpop.f32.mrb[35].mxu0  ;;  %2973 = vmatpush1.bf16.msra.mxu1 %v2956_v42  ;;  %v2827_v27 = vmax.f32 %v2785_v58, 0.0 }
 0x3db   : > { %v2791_v40 = vadd.f32 %v2790_v47, %v2613_v60  ;;  %v2828_v38 = vmax.f32 %v2787_v1, 0.0  ;;  %v3055_v47 = vpop.permute.xlu0 %3054 }
 0x3dc   : > { %v2829_v13 = vmax.f32 %v2789_v61, 0.0 }
 0x3dd   : > { %v2830_v9 = vmax.f32 %v2791_v40, 0.0 }
 0x3de   : > { %v2958_v32 = vpack.c.bf16 %v2829_v13, %v2827_v27 }
 0x3df   : > { %v2959_v50 = vpack.c.bf16 %v2830_v9, %v2828_v38  ;;  %v2794_v12 = vpop.f32.mrb[36].mxu0 }
 0x3e0   : > { %v2795_v6 = vadd.f32 %v2794_v12, %v2618_v33  ;;  %v2796_v34 = vpop.f32.mrb[37].mxu0 }
 0x3e1   : > { %v2797_v37 = vadd.f32 %v2796_v34, %v2618_v33  ;;  %v2798_v41 = vpop.f32.mrb[38].mxu0  ;;  %2974 = vmatprep.subr.bf16.mxu1 %v2959_v50 }
 0x3e2   : > { %v2799_v48 = vadd.f32 %v2798_v41, %v2623_v55  ;;  %v2800_v5 = vpop.f32.mrb[39].mxu0  ;;  %2975 = vmatpush1.bf16.msra.mxu1 %v2958_v32  ;;  %v2831_v23 = vmax.f32 %v2795_v6, 0.0 }
 0x3e3   : > { %v2801_v45 = vadd.f32 %v2800_v5, %v2623_v55  ;;  %v2832_v30 = vmax.f32 %v2797_v37, 0.0 }
 0x3e4   : > { %v2833_v4 = vmax.f32 %v2799_v48, 0.0 }
 0x3e5   : > { %v2834_v51 = vmax.f32 %v2801_v45, 0.0 }
 0x3e6   : > { %v2960_v21 = vpack.c.bf16 %v2833_v4, %v2831_v23 }
 0x3e7   : > { %v2961_v14 = vpack.c.bf16 %v2834_v51, %v2832_v30 }
 0x3e9   : > { %2976 = vmatprep.subr.bf16.mxu1 %v2961_v14 }
 0x3ea   : > { %2977 = vmatpush1.bf16.msra.mxu1 %v2960_v21 }
 0x3ed   : > { %3230 = vmatmul.mubr.msk.bf16.vlgmr.msra.gmra.mrb[16].mxu1 %vm2962_vm0, %v2949_v20 }
 0x490   : > { %v2917_v28 = vpop.f32.mrb[8].mxu1 }
 0x491   : > { %v2918_v44 = vadd.f32 %v2917_v28, %v2850_v46  ;;  %v2919_v54 = vpop.f32.mrb[9].mxu1 }
 0x492   : > { %v2920_v15 = vadd.f32 %v2919_v54, %v2850_v46  ;;  %v2921_v36 = vpop.f32.mrb[10].mxu1 }
 0x493   : > { %v2922_v2 = vadd.f32 %v2921_v36, %v2855_v17  ;;  %v2923_v3 = vpop.f32.mrb[11].mxu1  ;;  %v2936_v35 = vmax.f32 %v2918_v44, 0.0 }
 0x494   : > { %v2924_v16 = vadd.f32 %v2923_v3, %v2855_v17  ;;  %v2937_v11 = vmax.f32 %v2920_v15, 0.0 }
 0x495   : > { %v2938_v52 = vmax.f32 %v2922_v2, 0.0 }
 0x496   : > { %v2939_v26 = vmax.f32 %v2924_v16, 0.0 }
 0x497   : > { %v2945_v29 = vpack.c.bf16 %v2938_v52, %v2936_v35 }
 0x498   : > { %v2946_v24 = vpack.c.bf16 %v2939_v26, %v2937_v11  ;;  %v2927_v18 = vpop.f32.mrb[12].mxu1 }
 0x499   : > { %v2928_v63 = vadd.f32 %v2927_v18, %v2860_v62  ;;  %v2929_v53 = vpop.f32.mrb[13].mxu1 }
 0x49a   : > { %v2930_v0 = vadd.f32 %v2929_v53, %v2860_v62  ;;  %v2931_v59 = vpop.f32.mrb[14].mxu1  ;;  %3010 = vmatprep.subr.bf16.mxu0 %v2946_v24 }
 0x49b   : > { %v2932_v22 = vadd.f32 %v2931_v59, %v2865_v8  ;;  %v2933_v10 = vpop.f32.mrb[15].mxu1  ;;  %3011 = vmatpush1.bf16.msra.mxu0 %v2945_v29  ;;  %v2940_v31 = vmax.f32 %v2928_v63, 0.0 }
 0x49c   : > { %v2934_v49 = vadd.f32 %v2933_v10, %v2865_v8  ;;  %v2941_v60 = vmax.f32 %v2930_v0, 0.0 }
 0x49d   : > { %v2942_v19 = vmax.f32 %v2932_v22, 0.0 }
 0x49e   : > { %v2943_v57 = vmax.f32 %v2934_v49, 0.0 }
 0x49f   : > { %v2947_v7 = vpack.c.bf16 %v2942_v19, %v2940_v31 }
 0x4a0   : > { %v2948_v42 = vpack.c.bf16 %v2943_v57, %v2941_v60 }
 0x4a2   : > { %3012 = vmatprep.subr.bf16.mxu0 %v2948_v42 }
 0x4a3   : > { %3013 = vmatpush1.bf16.msra.mxu0 %v2947_v7 }
 0x4a6   : > { %3231 = vmatmul.mubr.msk.bf16.vlgmr.msra.gmra.mrb[40].mxu0 %vm2665_vm1, %v2944_v43 }
 0x4c0   : > { %v3000_v56 = vpop.f32.mrb[16].mxu1 }
 0x4c1   : > { %v3002_v58 = vpop.f32.mrb[17].mxu1 }
 0x4c2   : > { %v3004_v25 = vpop.f32.mrb[18].mxu1 }
 0x4c3   : > { %v3005_v46 = vpop.f32.mrb[19].mxu1 }
 0x579   : > { %v3044_v1 = vpop.f32.mrb[40].mxu0 }
 0x57a   : > { %v3045_v39 = vadd.f32 %v3044_v1, %v3000_v56  ;;  %v3046_v61 = vpop.f32.mrb[41].mxu0 }
 0x57b   : > { %v3047_v17 = vadd.f32 %v3046_v61, %v3002_v58  ;;  %v3048_v40 = vpop.f32.mrb[42].mxu0 }
 0x57c   : > { %v3057_v27 = vadd.f32 %v3055_v47, %v3045_v39  ;;  %v3049_v13 = vpop.f32.mrb[43].mxu0 }
 0x57d   : > { %v3058_v38 = vadd.f32 %v3055_v47, %v3047_v17 }
 0x57e   : > { %3059 = vst [vmem:[%s442_s22] sm:$0xff] %v3057_v27 }
 0x57f   : > { %3060 = vst [vmem:[%s442_s22 + $0x8] sm:$0xff] %v3058_v38 }
 0x580 PF: > { %s23_s25 = sadd.s32 1, %s3357_s25  }
 0x581   : > { %p20_p4 = scmp.ge.s32.totalorder %s23_s25, 4  }
 0x583   :  { %22 = sbr.rel (!%p20_p4) target bundleno = 1 (0x1), region = 102 }

</bundles_post_ra>
